<compile_context>
chip_gen: v6e
topology: v6e:2x2x1
jax: 0.10.0
libtpu: 0.0.40
codegen_flags: <defaults>
</compile_context>

<pallas_src>
import jax
import jax.numpy as jnp
from jax import lax
from jax.experimental import pallas as pl
from jax.experimental.pallas import tpu as pltpu


def _encoder_gru_kernel(x_ref,      # (S, H)   pre-gathered embedding rows
                        wx_ref,     # (H, 3H)  input weights (W_ih^T), cols [r|z|n]
                        wh_ref,     # (H, 3H)  hidden weights (W_hh^T), cols [r|z|n]
                        bih_ref,    # (1, 3H)  input bias
                        bhh_ref,    # (1, 3H)  hidden bias
                        h0_ref,     # (1, H)   initial hidden state
                        out_ref,    # (S, H)   per-step hidden states (resident block)
                        gi_scratch  # (S, 3H)  f32 scratch for the hoisted input projection
                        ):
    S, H = x_ref.shape

    # ---- Hoisted input projection: ONE M=S MXU matmul, off the serial chain.
    gi_scratch[...] = (
        jnp.dot(x_ref[...].astype(wx_ref.dtype), wx_ref[...],
                preferred_element_type=jnp.float32)
        + bih_ref[...]
    )

    # ---- Serial recurrence: only the hidden-dependent matmul + gate math.
    def step(t, h):                                          # h: (1, H) f32
        gh = (jnp.dot(h.astype(wh_ref.dtype), wh_ref[...],
                      preferred_element_type=jnp.float32)
              + bhh_ref[...])                                # (1, 3H) f32
        gi = gi_scratch[pl.ds(t, 1), :]                      # (1, 3H) f32
        r = jax.nn.sigmoid(gi[:, 0:H] + gh[:, 0:H])
        z = jax.nn.sigmoid(gi[:, H:2 * H] + gh[:, H:2 * H])
        n = jnp.tanh(gi[:, 2 * H:3 * H] + r * gh[:, 2 * H:3 * H])
        h_new = (1.0 - z) * n + z * h                        # f32 gate math (v5e-safe)
        out_ref[pl.ds(t, 1), :] = h_new.astype(out_ref.dtype)
        return h_new

    lax.fori_loop(0, S, step, h0_ref[...].astype(jnp.float32), unroll=True)


def encoder_rnn_sequence(token_ids, hidden0, prep):
    """Run EncoderRNN over a whole token sequence in ONE fused kernel invocation.

    token_ids: int32 (S,); hidden0: f32 (1,1,H).
    Returns (outputs (S,1,1,H), final_hidden (1,1,H)) — the results of calling
    EncoderRNN.forward() once per token with the hidden carried along.
    """
    emb = prep["embedding"]                     # (V, H)
    H = emb.shape[1]
    S = token_ids.shape[0]

    # One contiguous gather in the wrapper (XLA) instead of S tiny in-kernel DMAs.
    x_seq = jnp.take(emb, token_ids.astype(jnp.int32), axis=0)   # (S, H)
    h0 = hidden0.reshape(1, H).astype(jnp.float32)

    vmem_spec = pl.BlockSpec(memory_space=pltpu.MemorySpace.VMEM)

    outs = pl.pallas_call(
        _encoder_gru_kernel,
        out_shape=jax.ShapeDtypeStruct((S, H), jnp.float32),
        in_specs=[vmem_spec] * 6,
        out_specs=vmem_spec,
        scratch_shapes=[pltpu.VMEM((S, 3 * H), jnp.float32)],
        compiler_params=pltpu.CompilerParams(vmem_limit_bytes=32 << 20),
    )(x_seq, prep["w_x"], prep["w_h"], prep["b_ih"], prep["b_hh"], h0)

    outputs = outs.reshape(S, 1, 1, H)
    final_hidden = outs[S - 1].reshape(1, 1, H)
    return outputs, final_hidden


def encoder_rnn_forward(token_idx, hidden, prep):
    """Single-step forward matching EncoderRNN.forward(input, hidden).

    token_idx: int32 (1,); hidden: f32 (1,1,H). Returns (output, hidden), each (1,1,H).
    """
    outs, h_new = encoder_rnn_sequence(token_idx.reshape(1), hidden, prep)
    return outs[0], h_new


def prepare_params(params, weight_dtype=jnp.bfloat16):
    """One-time layout prep (hoisted out of the per-call path).

    Keeps W_x = W_ih^T and W_h = W_hh^T as separate (H, 3H) matrices (no zero
    padding, no per-step concat). Biases stay f32. Weights/embedding default to
    bf16 (native MXU operand type); pass jnp.float32 for tight-tolerance checks.
    """
    return {
        "embedding": params["embedding"].astype(weight_dtype),       # (V, H)
        "w_x": params["w_ih"].T.astype(weight_dtype),                # (H, 3H)
        "w_h": params["w_hh"].T.astype(weight_dtype),                # (H, 3H)
        "b_ih": params["b_ih"].reshape(1, -1).astype(jnp.float32),   # (1, 3H)
        "b_hh": params["b_hh"].reshape(1, -1).astype(jnp.float32),   # (1, 3H)
    }


def encoder_rnn_reference_sequence(token_ids, hidden0, params):
    """Pure-JAX reference: per-token PyTorch-style GRU step loop (f32)."""
    H = hidden0.shape[-1]
    h = hidden0.reshape(1, H).astype(jnp.float32)
    outs = []
    for t in range(token_ids.shape[0]):
        x = params["embedding"][token_ids[t]].reshape(1, H).astype(jnp.float32)
        gi = x @ params["w_ih"].T.astype(jnp.float32) + params["b_ih"]
        gh = h @ params["w_hh"].T.astype(jnp.float32) + params["b_hh"]
        r = jax.nn.sigmoid(gi[:, 0:H] + gh[:, 0:H])
        z = jax.nn.sigmoid(gi[:, H:2 * H] + gh[:, H:2 * H])
        n = jnp.tanh(gi[:, 2 * H:] + r * gh[:, 2 * H:])
        h = (1.0 - z) * n + z * h
        outs.append(h)
    return jnp.stack(outs).reshape(-1, 1, 1, H), h.reshape(1, 1, H)


def init_params(key, input_size, hidden_size):
    k_emb, k_wih, k_whh, k_bih, k_bhh = jax.random.split(key, 5)
    bound = 1.0 / (hidden_size ** 0.5)
    return {
        # nn.Embedding default init: N(0, 1)
        "embedding": jax.random.normal(k_emb, (input_size, hidden_size), jnp.float32),
        # nn.GRU default init: U(-1/sqrt(H), 1/sqrt(H)), gate order [r|z|n]
        "w_ih": jax.random.uniform(k_wih, (3 * hidden_size, hidden_size),
                                   jnp.float32, -bound, bound),
        "w_hh": jax.random.uniform(k_whh, (3 * hidden_size, hidden_size),
                                   jnp.float32, -bound, bound),
        "b_ih": jax.random.uniform(k_bih, (3 * hidden_size,), jnp.float32, -bound, bound),
        "b_hh": jax.random.uniform(k_bhh, (3 * hidden_size,), jnp.float32, -bound, bound),
    }


if __name__ == "__main__":
    VOCAB = 64     # input_size (vocab)
    HIDDEN = 128   # hidden_size (lane-aligned)
    SEQ = 8        # tokens fused into one kernel launch (sublane-aligned output)

    key = jax.random.PRNGKey(0)
    k_params, k_tok = jax.random.split(key)
    params = init_params(k_params, VOCAB, HIDDEN)

    tokens = jax.random.randint(k_tok, (SEQ,), 0, VOCAB, dtype=jnp.int32)
    hidden0 = jnp.zeros((1, 1, HIDDEN), jnp.float32)   # EncoderRNN.initHidden()

    ref_outs, ref_h = encoder_rnn_reference_sequence(tokens, hidden0, params)

    # --- f32 weights: tight-tolerance correctness check.
    prep_f32 = prepare_params(params, weight_dtype=jnp.float32)
    outs, h_new = encoder_rnn_sequence(tokens, hidden0, prep_f32)
    outs, h_new = jax.block_until_ready((outs, h_new))
    assert outs.shape == (SEQ, 1, 1, HIDDEN) and h_new.shape == (1, 1, HIDDEN)
    assert jnp.allclose(outs, ref_outs, atol=1e-5, rtol=1e-5)
    assert jnp.allclose(h_new, ref_h, atol=1e-5, rtol=1e-5)

    # --- bf16 weights (default, MXU-native): looser tolerance vs f32 reference.
    prep_bf16 = prepare_params(params)   # weight_dtype=jnp.bfloat16
    outs_bf, h_bf = encoder_rnn_sequence(tokens, hidden0, prep_bf16)
    outs_bf, h_bf = jax.block_until_ready((outs_bf, h_bf))
    assert jnp.allclose(outs_bf, ref_outs, atol=5e-2, rtol=0)
    assert jnp.allclose(h_bf, ref_h, atol=5e-2, rtol=0)

    # --- Single-step forward matching EncoderRNN.forward(input, hidden).
    out1, h1 = encoder_rnn_forward(tokens[:1], hidden0, prep_f32)
    out1, h1 = jax.block_until_ready((out1, h1))
    ref_out1, ref_h1 = encoder_rnn_reference_sequence(tokens[:1], hidden0, params)
    assert out1.shape == (1, 1, HIDDEN) and h1.shape == (1, 1, HIDDEN)
    assert jnp.allclose(out1, ref_out1[0], atol=1e-5, rtol=1e-5)
    assert jnp.allclose(h1, ref_h1, atol=1e-5, rtol=1e-5)

    print("KERNEL_OK")
</pallas_src>

<mosaic_0001>
module attributes {stable_mosaic.version = 11 : i64} {
  func.func @_encoder_gru_kernel(%arg0: memref<8x128xf32, #tpu.memory_space<vmem>>, %arg1: memref<128x384xf32, #tpu.memory_space<vmem>>, %arg2: memref<128x384xf32, #tpu.memory_space<vmem>>, %arg3: memref<1x384xf32, #tpu.memory_space<vmem>>, %arg4: memref<1x384xf32, #tpu.memory_space<vmem>>, %arg5: memref<1x128xf32, #tpu.memory_space<vmem>>, %arg6: memref<8x128xf32, #tpu.memory_space<vmem>>, %arg7: memref<8x384xf32, #tpu.memory_space<vmem>>) attributes {dimension_semantics = [], scalar_prefetch = 0 : i64, scratch_operands = 1 : i64, tpu.core_type = #tpu.core_type<tc>} {
    %c0 = arith.constant 0 : index
    %c0_0 = arith.constant 0 : index
    %0 = vector.load %arg0[%c0, %c0_0] : memref<8x128xf32, #tpu.memory_space<vmem>>, vector<8x128xf32>
    %c0_1 = arith.constant 0 : index
    %c0_2 = arith.constant 0 : index
    %1 = vector.load %arg1[%c0_1, %c0_2] : memref<128x384xf32, #tpu.memory_space<vmem>>, vector<128x384xf32>
    %cst = arith.constant dense<0.000000e+00> : vector<8x384xf32>
    %2 = tpu.matmul %0, %1, %cst {dimension_numbers = #tpu.dot_dimension_numbers<[1], [0], [0], [1], [0, 0, 1, 1], [], []>} : vector<8x128xf32>, vector<128x384xf32>, vector<8x384xf32> -> vector<8x384xf32>
    %c0_3 = arith.constant 0 : index
    %c0_4 = arith.constant 0 : index
    %3 = vector.load %arg3[%c0_3, %c0_4] : memref<1x384xf32, #tpu.memory_space<vmem>>, vector<1x384xf32>
    %4 = vector.broadcast %3 : vector<1x384xf32> to vector<8x384xf32>
    %5 = arith.addf %2, %4 : vector<8x384xf32>
    %c0_5 = arith.constant 0 : index
    %c0_6 = arith.constant 0 : index
    %6 = vector.load %arg7[%c0_5, %c0_6] : memref<8x384xf32, #tpu.memory_space<vmem>>, vector<8x384xf32>
    tpu.vector_store %arg7[%c0_5, %c0_6], %5 {strides = array<i32>} : memref<8x384xf32, #tpu.memory_space<vmem>>, vector<8x384xf32>,
    %c0_7 = arith.constant 0 : index
    %c0_8 = arith.constant 0 : index
    %7 = vector.load %arg5[%c0_7, %c0_8] : memref<1x128xf32, #tpu.memory_space<vmem>>, vector<1x128xf32>
    %c0_i32 = arith.constant 0 : i32
    %c0_9 = arith.constant 0 : index
    %c0_10 = arith.constant 0 : index
    %8 = vector.load %arg2[%c0_9, %c0_10] : memref<128x384xf32, #tpu.memory_space<vmem>>, vector<128x384xf32>
    %cst_11 = arith.constant dense<0.000000e+00> : vector<1x384xf32>
    %9 = tpu.matmul %7, %8, %cst_11 {dimension_numbers = #tpu.dot_dimension_numbers<[1], [0], [0], [1], [0, 0, 1, 1], [], []>} : vector<1x128xf32>, vector<128x384xf32>, vector<1x384xf32> -> vector<1x384xf32>
    %c0_12 = arith.constant 0 : index
    %c0_13 = arith.constant 0 : index
    %10 = vector.load %arg4[%c0_12, %c0_13] : memref<1x384xf32, #tpu.memory_space<vmem>>, vector<1x384xf32>
    %11 = arith.addf %9, %10 : vector<1x384xf32>
    %12 = arith.index_cast %c0_i32 : i32 to index
    %c0_14 = arith.constant 0 : index
    %13 = vector.load %arg7[%12, %c0_14] : memref<8x384xf32, #tpu.memory_space<vmem>>, vector<1x384xf32>
    %14 = vector.extract_strided_slice %13 {offsets = [0, 0], sizes = [1, 128], strides = [1, 1]} : vector<1x384xf32> to vector<1x128xf32>
    %15 = vector.extract_strided_slice %11 {offsets = [0, 0], sizes = [1, 128], strides = [1, 1]} : vector<1x384xf32> to vector<1x128xf32>
    %16 = arith.addf %14, %15 : vector<1x128xf32>
    %17 = arith.negf %16 : vector<1x128xf32>
    %18 = math.exp %17 : vector<1x128xf32>
    %cst_15 = arith.constant 1.000000e+00 : f32
    %19 = vector.broadcast %cst_15 : f32 to vector<1x128xf32>
    %20 = arith.addf %19, %18 : vector<1x128xf32>
    %21 = arith.divf %19, %20 : vector<1x128xf32>
    %22 = vector.extract_strided_slice %13 {offsets = [0, 128], sizes = [1, 128], strides = [1, 1]} : vector<1x384xf32> to vector<1x128xf32>
    %23 = vector.extract_strided_slice %11 {offsets = [0, 128], sizes = [1, 128], strides = [1, 1]} : vector<1x384xf32> to vector<1x128xf32>
    %24 = arith.addf %22, %23 : vector<1x128xf32>
    %25 = arith.negf %24 : vector<1x128xf32>
    %26 = math.exp %25 : vector<1x128xf32>
    %cst_16 = arith.constant 1.000000e+00 : f32
    %27 = vector.broadcast %cst_16 : f32 to vector<1x128xf32>
    %28 = arith.addf %27, %26 : vector<1x128xf32>
    %29 = arith.divf %27, %28 : vector<1x128xf32>
    %30 = vector.extract_strided_slice %13 {offsets = [0, 256], sizes = [1, 128], strides = [1, 1]} : vector<1x384xf32> to vector<1x128xf32>
    %31 = vector.extract_strided_slice %11 {offsets = [0, 256], sizes = [1, 128], strides = [1, 1]} : vector<1x384xf32> to vector<1x128xf32>
    %32 = arith.mulf %21, %31 : vector<1x128xf32>
    %33 = arith.addf %30, %32 : vector<1x128xf32>
    %34 = math.tanh %33 : vector<1x128xf32>
    %cst_17 = arith.constant 1.000000e+00 : f32
    %35 = vector.broadcast %cst_17 : f32 to vector<1x128xf32>
    %36 = arith.subf %35, %29 : vector<1x128xf32>
    %37 = arith.mulf %36, %34 : vector<1x128xf32>
    %38 = arith.mulf %29, %7 : vector<1x128xf32>
    %39 = arith.addf %37, %38 : vector<1x128xf32>
    %40 = arith.index_cast %c0_i32 : i32 to index
    %c0_18 = arith.constant 0 : index
    %41 = vector.load %arg6[%40, %c0_18] : memref<8x128xf32, #tpu.memory_space<vmem>>, vector<1x128xf32>
    tpu.vector_store %arg6[%40, %c0_18], %39 {strides = array<i32>} : memref<8x128xf32, #tpu.memory_space<vmem>>, vector<1x128xf32>,
    %c1_i32 = arith.constant 1 : i32
    %c0_19 = arith.constant 0 : index
    %c0_20 = arith.constant 0 : index
    %42 = vector.load %arg2[%c0_19, %c0_20] : memref<128x384xf32, #tpu.memory_space<vmem>>, vector<128x384xf32>
    %cst_21 = arith.constant dense<0.000000e+00> : vector<1x384xf32>
    %43 = tpu.matmul %39, %42, %cst_21 {dimension_numbers = #tpu.dot_dimension_numbers<[1], [0], [0], [1], [0, 0, 1, 1], [], []>} : vector<1x128xf32>, vector<128x384xf32>, vector<1x384xf32> -> vector<1x384xf32>
    %c0_22 = arith.constant 0 : index
    %c0_23 = arith.constant 0 : index
    %44 = vector.load %arg4[%c0_22, %c0_23] : memref<1x384xf32, #tpu.memory_space<vmem>>, vector<1x384xf32>
    %45 = arith.addf %43, %44 : vector<1x384xf32>
    %46 = arith.index_cast %c1_i32 : i32 to index
    %c0_24 = arith.constant 0 : index
    %47 = vector.load %arg7[%46, %c0_24] : memref<8x384xf32, #tpu.memory_space<vmem>>, vector<1x384xf32>
    %48 = vector.extract_strided_slice %47 {offsets = [0, 0], sizes = [1, 128], strides = [1, 1]} : vector<1x384xf32> to vector<1x128xf32>
    %49 = vector.extract_strided_slice %45 {offsets = [0, 0], sizes = [1, 128], strides = [1, 1]} : vector<1x384xf32> to vector<1x128xf32>
    %50 = arith.addf %48, %49 : vector<1x128xf32>
    %51 = arith.negf %50 : vector<1x128xf32>
    %52 = math.exp %51 : vector<1x128xf32>
    %cst_25 = arith.constant 1.000000e+00 : f32
    %53 = vector.broadcast %cst_25 : f32 to vector<1x128xf32>
    %54 = arith.addf %53, %52 : vector<1x128xf32>
    %55 = arith.divf %53, %54 : vector<1x128xf32>
    %56 = vector.extract_strided_slice %47 {offsets = [0, 128], sizes = [1, 128], strides = [1, 1]} : vector<1x384xf32> to vector<1x128xf32>
    %57 = vector.extract_strided_slice %45 {offsets = [0, 128], sizes = [1, 128], strides = [1, 1]} : vector<1x384xf32> to vector<1x128xf32>
    %58 = arith.addf %56, %57 : vector<1x128xf32>
    %59 = arith.negf %58 : vector<1x128xf32>
    %60 = math.exp %59 : vector<1x128xf32>
    %cst_26 = arith.constant 1.000000e+00 : f32
    %61 = vector.broadcast %cst_26 : f32 to vector<1x128xf32>
    %62 = arith.addf %61, %60 : vector<1x128xf32>
    %63 = arith.divf %61, %62 : vector<1x128xf32>
    %64 = vector.extract_strided_slice %47 {offsets = [0, 256], sizes = [1, 128], strides = [1, 1]} : vector<1x384xf32> to vector<1x128xf32>
    %65 = vector.extract_strided_slice %45 {offsets = [0, 256], sizes = [1, 128], strides = [1, 1]} : vector<1x384xf32> to vector<1x128xf32>
    %66 = arith.mulf %55, %65 : vector<1x128xf32>
    %67 = arith.addf %64, %66 : vector<1x128xf32>
    %68 = math.tanh %67 : vector<1x128xf32>
    %cst_27 = arith.constant 1.000000e+00 : f32
    %69 = vector.broadcast %cst_27 : f32 to vector<1x128xf32>
    %70 = arith.subf %69, %63 : vector<1x128xf32>
    %71 = arith.mulf %70, %68 : vector<1x128xf32>
    %72 = arith.mulf %63, %39 : vector<1x128xf32>
    %73 = arith.addf %71, %72 : vector<1x128xf32>
    %74 = arith.index_cast %c1_i32 : i32 to index
    %c0_28 = arith.constant 0 : index
    %75 = vector.load %arg6[%74, %c0_28] : memref<8x128xf32, #tpu.memory_space<vmem>>, vector<1x128xf32>
    tpu.vector_store %arg6[%74, %c0_28], %73 {strides = array<i32>} : memref<8x128xf32, #tpu.memory_space<vmem>>, vector<1x128xf32>,
    %c2_i32 = arith.constant 2 : i32
    %c0_29 = arith.constant 0 : index
    %c0_30 = arith.constant 0 : index
    %76 = vector.load %arg2[%c0_29, %c0_30] : memref<128x384xf32, #tpu.memory_space<vmem>>, vector<128x384xf32>
    %cst_31 = arith.constant dense<0.000000e+00> : vector<1x384xf32>
    %77 = tpu.matmul %73, %76, %cst_31 {dimension_numbers = #tpu.dot_dimension_numbers<[1], [0], [0], [1], [0, 0, 1, 1], [], []>} : vector<1x128xf32>, vector<128x384xf32>, vector<1x384xf32> -> vector<1x384xf32>
    %c0_32 = arith.constant 0 : index
    %c0_33 = arith.constant 0 : index
    %78 = vector.load %arg4[%c0_32, %c0_33] : memref<1x384xf32, #tpu.memory_space<vmem>>, vector<1x384xf32>
    %79 = arith.addf %77, %78 : vector<1x384xf32>
    %80 = arith.index_cast %c2_i32 : i32 to index
    %c0_34 = arith.constant 0 : index
    %81 = vector.load %arg7[%80, %c0_34] : memref<8x384xf32, #tpu.memory_space<vmem>>, vector<1x384xf32>
    %82 = vector.extract_strided_slice %81 {offsets = [0, 0], sizes = [1, 128], strides = [1, 1]} : vector<1x384xf32> to vector<1x128xf32>
    %83 = vector.extract_strided_slice %79 {offsets = [0, 0], sizes = [1, 128], strides = [1, 1]} : vector<1x384xf32> to vector<1x128xf32>
    %84 = arith.addf %82, %83 : vector<1x128xf32>
    %85 = arith.negf %84 : vector<1x128xf32>
    %86 = math.exp %85 : vector<1x128xf32>
    %cst_35 = arith.constant 1.000000e+00 : f32
    %87 = vector.broadcast %cst_35 : f32 to vector<1x128xf32>
    %88 = arith.addf %87, %86 : vector<1x128xf32>
    %89 = arith.divf %87, %88 : vector<1x128xf32>
    %90 = vector.extract_strided_slice %81 {offsets = [0, 128], sizes = [1, 128], strides = [1, 1]} : vector<1x384xf32> to vector<1x128xf32>
    %91 = vector.extract_strided_slice %79 {offsets = [0, 128], sizes = [1, 128], strides = [1, 1]} : vector<1x384xf32> to vector<1x128xf32>
    %92 = arith.addf %90, %91 : vector<1x128xf32>
    %93 = arith.negf %92 : vector<1x128xf32>
    %94 = math.exp %93 : vector<1x128xf32>
    %cst_36 = arith.constant 1.000000e+00 : f32
    %95 = vector.broadcast %cst_36 : f32 to vector<1x128xf32>
    %96 = arith.addf %95, %94 : vector<1x128xf32>
    %97 = arith.divf %95, %96 : vector<1x128xf32>
    %98 = vector.extract_strided_slice %81 {offsets = [0, 256], sizes = [1, 128], strides = [1, 1]} : vector<1x384xf32> to vector<1x128xf32>
    %99 = vector.extract_strided_slice %79 {offsets = [0, 256], sizes = [1, 128], strides = [1, 1]} : vector<1x384xf32> to vector<1x128xf32>
    %100 = arith.mulf %89, %99 : vector<1x128xf32>
    %101 = arith.addf %98, %100 : vector<1x128xf32>
    %102 = math.tanh %101 : vector<1x128xf32>
    %cst_37 = arith.constant 1.000000e+00 : f32
    %103 = vector.broadcast %cst_37 : f32 to vector<1x128xf32>
    %104 = arith.subf %103, %97 : vector<1x128xf32>
    %105 = arith.mulf %104, %102 : vector<1x128xf32>
    %106 = arith.mulf %97, %73 : vector<1x128xf32>
    %107 = arith.addf %105, %106 : vector<1x128xf32>
    %108 = arith.index_cast %c2_i32 : i32 to index
    %c0_38 = arith.constant 0 : index
    %109 = vector.load %arg6[%108, %c0_38] : memref<8x128xf32, #tpu.memory_space<vmem>>, vector<1x128xf32>
    tpu.vector_store %arg6[%108, %c0_38], %107 {strides = array<i32>} : memref<8x128xf32, #tpu.memory_space<vmem>>, vector<1x128xf32>,
    %c3_i32 = arith.constant 3 : i32
    %c0_39 = arith.constant 0 : index
    %c0_40 = arith.constant 0 : index
    %110 = vector.load %arg2[%c0_39, %c0_40] : memref<128x384xf32, #tpu.memory_space<vmem>>, vector<128x384xf32>
    %cst_41 = arith.constant dense<0.000000e+00> : vector<1x384xf32>
    %111 = tpu.matmul %107, %110, %cst_41 {dimension_numbers = #tpu.dot_dimension_numbers<[1], [0], [0], [1], [0, 0, 1, 1], [], []>} : vector<1x128xf32>, vector<128x384xf32>, vector<1x384xf32> -> vector<1x384xf32>
    %c0_42 = arith.constant 0 : index
    %c0_43 = arith.constant 0 : index
    %112 = vector.load %arg4[%c0_42, %c0_43] : memref<1x384xf32, #tpu.memory_space<vmem>>, vector<1x384xf32>
    %113 = arith.addf %111, %112 : vector<1x384xf32>
    %114 = arith.index_cast %c3_i32 : i32 to index
    %c0_44 = arith.constant 0 : index
    %115 = vector.load %arg7[%114, %c0_44] : memref<8x384xf32, #tpu.memory_space<vmem>>, vector<1x384xf32>
    %116 = vector.extract_strided_slice %115 {offsets = [0, 0], sizes = [1, 128], strides = [1, 1]} : vector<1x384xf32> to vector<1x128xf32>
    %117 = vector.extract_strided_slice %113 {offsets = [0, 0], sizes = [1, 128], strides = [1, 1]} : vector<1x384xf32> to vector<1x128xf32>
    %118 = arith.addf %116, %117 : vector<1x128xf32>
    %119 = arith.negf %118 : vector<1x128xf32>
    %120 = math.exp %119 : vector<1x128xf32>
    %cst_45 = arith.constant 1.000000e+00 : f32
    %121 = vector.broadcast %cst_45 : f32 to vector<1x128xf32>
    %122 = arith.addf %121, %120 : vector<1x128xf32>
    %123 = arith.divf %121, %122 : vector<1x128xf32>
    %124 = vector.extract_strided_slice %115 {offsets = [0, 128], sizes = [1, 128], strides = [1, 1]} : vector<1x384xf32> to vector<1x128xf32>
    %125 = vector.extract_strided_slice %113 {offsets = [0, 128], sizes = [1, 128], strides = [1, 1]} : vector<1x384xf32> to vector<1x128xf32>
    %126 = arith.addf %124, %125 : vector<1x128xf32>
    %127 = arith.negf %126 : vector<1x128xf32>
    %128 = math.exp %127 : vector<1x128xf32>
    %cst_46 = arith.constant 1.000000e+00 : f32
    %129 = vector.broadcast %cst_46 : f32 to vector<1x128xf32>
    %130 = arith.addf %129, %128 : vector<1x128xf32>
    %131 = arith.divf %129, %130 : vector<1x128xf32>
    %132 = vector.extract_strided_slice %115 {offsets = [0, 256], sizes = [1, 128], strides = [1, 1]} : vector<1x384xf32> to vector<1x128xf32>
    %133 = vector.extract_strided_slice %113 {offsets = [0, 256], sizes = [1, 128], strides = [1, 1]} : vector<1x384xf32> to vector<1x128xf32>
    %134 = arith.mulf %123, %133 : vector<1x128xf32>
    %135 = arith.addf %132, %134 : vector<1x128xf32>
    %136 = math.tanh %135 : vector<1x128xf32>
    %cst_47 = arith.constant 1.000000e+00 : f32
    %137 = vector.broadcast %cst_47 : f32 to vector<1x128xf32>
    %138 = arith.subf %137, %131 : vector<1x128xf32>
    %139 = arith.mulf %138, %136 : vector<1x128xf32>
    %140 = arith.mulf %131, %107 : vector<1x128xf32>
    %141 = arith.addf %139, %140 : vector<1x128xf32>
    %142 = arith.index_cast %c3_i32 : i32 to index
    %c0_48 = arith.constant 0 : index
    %143 = vector.load %arg6[%142, %c0_48] : memref<8x128xf32, #tpu.memory_space<vmem>>, vector<1x128xf32>
    tpu.vector_store %arg6[%142, %c0_48], %141 {strides = array<i32>} : memref<8x128xf32, #tpu.memory_space<vmem>>, vector<1x128xf32>,
    %c4_i32 = arith.constant 4 : i32
    %c0_49 = arith.constant 0 : index
    %c0_50 = arith.constant 0 : index
    %144 = vector.load %arg2[%c0_49, %c0_50] : memref<128x384xf32, #tpu.memory_space<vmem>>, vector<128x384xf32>
    %cst_51 = arith.constant dense<0.000000e+00> : vector<1x384xf32>
    %145 = tpu.matmul %141, %144, %cst_51 {dimension_numbers = #tpu.dot_dimension_numbers<[1], [0], [0], [1], [0, 0, 1, 1], [], []>} : vector<1x128xf32>, vector<128x384xf32>, vector<1x384xf32> -> vector<1x384xf32>
    %c0_52 = arith.constant 0 : index
    %c0_53 = arith.constant 0 : index
    %146 = vector.load %arg4[%c0_52, %c0_53] : memref<1x384xf32, #tpu.memory_space<vmem>>, vector<1x384xf32>
    %147 = arith.addf %145, %146 : vector<1x384xf32>
    %148 = arith.index_cast %c4_i32 : i32 to index
    %c0_54 = arith.constant 0 : index
    %149 = vector.load %arg7[%148, %c0_54] : memref<8x384xf32, #tpu.memory_space<vmem>>, vector<1x384xf32>
    %150 = vector.extract_strided_slice %149 {offsets = [0, 0], sizes = [1, 128], strides = [1, 1]} : vector<1x384xf32> to vector<1x128xf32>
    %151 = vector.extract_strided_slice %147 {offsets = [0, 0], sizes = [1, 128], strides = [1, 1]} : vector<1x384xf32> to vector<1x128xf32>
    %152 = arith.addf %150, %151 : vector<1x128xf32>
    %153 = arith.negf %152 : vector<1x128xf32>
    %154 = math.exp %153 : vector<1x128xf32>
    %cst_55 = arith.constant 1.000000e+00 : f32
    %155 = vector.broadcast %cst_55 : f32 to vector<1x128xf32>
    %156 = arith.addf %155, %154 : vector<1x128xf32>
    %157 = arith.divf %155, %156 : vector<1x128xf32>
    %158 = vector.extract_strided_slice %149 {offsets = [0, 128], sizes = [1, 128], strides = [1, 1]} : vector<1x384xf32> to vector<1x128xf32>
    %159 = vector.extract_strided_slice %147 {offsets = [0, 128], sizes = [1, 128], strides = [1, 1]} : vector<1x384xf32> to vector<1x128xf32>
    %160 = arith.addf %158, %159 : vector<1x128xf32>
    %161 = arith.negf %160 : vector<1x128xf32>
    %162 = math.exp %161 : vector<1x128xf32>
    %cst_56 = arith.constant 1.000000e+00 : f32
    %163 = vector.broadcast %cst_56 : f32 to vector<1x128xf32>
    %164 = arith.addf %163, %162 : vector<1x128xf32>
    %165 = arith.divf %163, %164 : vector<1x128xf32>
    %166 = vector.extract_strided_slice %149 {offsets = [0, 256], sizes = [1, 128], strides = [1, 1]} : vector<1x384xf32> to vector<1x128xf32>
    %167 = vector.extract_strided_slice %147 {offsets = [0, 256], sizes = [1, 128], strides = [1, 1]} : vector<1x384xf32> to vector<1x128xf32>
    %168 = arith.mulf %157, %167 : vector<1x128xf32>
    %169 = arith.addf %166, %168 : vector<1x128xf32>
    %170 = math.tanh %169 : vector<1x128xf32>
    %cst_57 = arith.constant 1.000000e+00 : f32
    %171 = vector.broadcast %cst_57 : f32 to vector<1x128xf32>
    %172 = arith.subf %171, %165 : vector<1x128xf32>
    %173 = arith.mulf %172, %170 : vector<1x128xf32>
    %174 = arith.mulf %165, %141 : vector<1x128xf32>
    %175 = arith.addf %173, %174 : vector<1x128xf32>
    %176 = arith.index_cast %c4_i32 : i32 to index
    %c0_58 = arith.constant 0 : index
    %177 = vector.load %arg6[%176, %c0_58] : memref<8x128xf32, #tpu.memory_space<vmem>>, vector<1x128xf32>
    tpu.vector_store %arg6[%176, %c0_58], %175 {strides = array<i32>} : memref<8x128xf32, #tpu.memory_space<vmem>>, vector<1x128xf32>,
    %c5_i32 = arith.constant 5 : i32
    %c0_59 = arith.constant 0 : index
    %c0_60 = arith.constant 0 : index
    %178 = vector.load %arg2[%c0_59, %c0_60] : memref<128x384xf32, #tpu.memory_space<vmem>>, vector<128x384xf32>
    %cst_61 = arith.constant dense<0.000000e+00> : vector<1x384xf32>
    %179 = tpu.matmul %175, %178, %cst_61 {dimension_numbers = #tpu.dot_dimension_numbers<[1], [0], [0], [1], [0, 0, 1, 1], [], []>} : vector<1x128xf32>, vector<128x384xf32>, vector<1x384xf32> -> vector<1x384xf32>
    %c0_62 = arith.constant 0 : index
    %c0_63 = arith.constant 0 : index
    %180 = vector.load %arg4[%c0_62, %c0_63] : memref<1x384xf32, #tpu.memory_space<vmem>>, vector<1x384xf32>
    %181 = arith.addf %179, %180 : vector<1x384xf32>
    %182 = arith.index_cast %c5_i32 : i32 to index
    %c0_64 = arith.constant 0 : index
    %183 = vector.load %arg7[%182, %c0_64] : memref<8x384xf32, #tpu.memory_space<vmem>>, vector<1x384xf32>
    %184 = vector.extract_strided_slice %183 {offsets = [0, 0], sizes = [1, 128], strides = [1, 1]} : vector<1x384xf32> to vector<1x128xf32>
    %185 = vector.extract_strided_slice %181 {offsets = [0, 0], sizes = [1, 128], strides = [1, 1]} : vector<1x384xf32> to vector<1x128xf32>
    %186 = arith.addf %184, %185 : vector<1x128xf32>
    %187 = arith.negf %186 : vector<1x128xf32>
    %188 = math.exp %187 : vector<1x128xf32>
    %cst_65 = arith.constant 1.000000e+00 : f32
    %189 = vector.broadcast %cst_65 : f32 to vector<1x128xf32>
    %190 = arith.addf %189, %188 : vector<1x128xf32>
    %191 = arith.divf %189, %190 : vector<1x128xf32>
    %192 = vector.extract_strided_slice %183 {offsets = [0, 128], sizes = [1, 128], strides = [1, 1]} : vector<1x384xf32> to vector<1x128xf32>
    %193 = vector.extract_strided_slice %181 {offsets = [0, 128], sizes = [1, 128], strides = [1, 1]} : vector<1x384xf32> to vector<1x128xf32>
    %194 = arith.addf %192, %193 : vector<1x128xf32>
    %195 = arith.negf %194 : vector<1x128xf32>
    %196 = math.exp %195 : vector<1x128xf32>
    %cst_66 = arith.constant 1.000000e+00 : f32
    %197 = vector.broadcast %cst_66 : f32 to vector<1x128xf32>
    %198 = arith.addf %197, %196 : vector<1x128xf32>
    %199 = arith.divf %197, %198 : vector<1x128xf32>
    %200 = vector.extract_strided_slice %183 {offsets = [0, 256], sizes = [1, 128], strides = [1, 1]} : vector<1x384xf32> to vector<1x128xf32>
    %201 = vector.extract_strided_slice %181 {offsets = [0, 256], sizes = [1, 128], strides = [1, 1]} : vector<1x384xf32> to vector<1x128xf32>
    %202 = arith.mulf %191, %201 : vector<1x128xf32>
    %203 = arith.addf %200, %202 : vector<1x128xf32>
    %204 = math.tanh %203 : vector<1x128xf32>
    %cst_67 = arith.constant 1.000000e+00 : f32
    %205 = vector.broadcast %cst_67 : f32 to vector<1x128xf32>
    %206 = arith.subf %205, %199 : vector<1x128xf32>
    %207 = arith.mulf %206, %204 : vector<1x128xf32>
    %208 = arith.mulf %199, %175 : vector<1x128xf32>
    %209 = arith.addf %207, %208 : vector<1x128xf32>
    %210 = arith.index_cast %c5_i32 : i32 to index
    %c0_68 = arith.constant 0 : index
    %211 = vector.load %arg6[%210, %c0_68] : memref<8x128xf32, #tpu.memory_space<vmem>>, vector<1x128xf32>
    tpu.vector_store %arg6[%210, %c0_68], %209 {strides = array<i32>} : memref<8x128xf32, #tpu.memory_space<vmem>>, vector<1x128xf32>,
    %c6_i32 = arith.constant 6 : i32
    %c0_69 = arith.constant 0 : index
    %c0_70 = arith.constant 0 : index
    %212 = vector.load %arg2[%c0_69, %c0_70] : memref<128x384xf32, #tpu.memory_space<vmem>>, vector<128x384xf32>
    %cst_71 = arith.constant dense<0.000000e+00> : vector<1x384xf32>
    %213 = tpu.matmul %209, %212, %cst_71 {dimension_numbers = #tpu.dot_dimension_numbers<[1], [0], [0], [1], [0, 0, 1, 1], [], []>} : vector<1x128xf32>, vector<128x384xf32>, vector<1x384xf32> -> vector<1x384xf32>
    %c0_72 = arith.constant 0 : index
    %c0_73 = arith.constant 0 : index
    %214 = vector.load %arg4[%c0_72, %c0_73] : memref<1x384xf32, #tpu.memory_space<vmem>>, vector<1x384xf32>
    %215 = arith.addf %213, %214 : vector<1x384xf32>
    %216 = arith.index_cast %c6_i32 : i32 to index
    %c0_74 = arith.constant 0 : index
    %217 = vector.load %arg7[%216, %c0_74] : memref<8x384xf32, #tpu.memory_space<vmem>>, vector<1x384xf32>
    %218 = vector.extract_strided_slice %217 {offsets = [0, 0], sizes = [1, 128], strides = [1, 1]} : vector<1x384xf32> to vector<1x128xf32>
    %219 = vector.extract_strided_slice %215 {offsets = [0, 0], sizes = [1, 128], strides = [1, 1]} : vector<1x384xf32> to vector<1x128xf32>
    %220 = arith.addf %218, %219 : vector<1x128xf32>
    %221 = arith.negf %220 : vector<1x128xf32>
    %222 = math.exp %221 : vector<1x128xf32>
    %cst_75 = arith.constant 1.000000e+00 : f32
    %223 = vector.broadcast %cst_75 : f32 to vector<1x128xf32>
    %224 = arith.addf %223, %222 : vector<1x128xf32>
    %225 = arith.divf %223, %224 : vector<1x128xf32>
    %226 = vector.extract_strided_slice %217 {offsets = [0, 128], sizes = [1, 128], strides = [1, 1]} : vector<1x384xf32> to vector<1x128xf32>
    %227 = vector.extract_strided_slice %215 {offsets = [0, 128], sizes = [1, 128], strides = [1, 1]} : vector<1x384xf32> to vector<1x128xf32>
    %228 = arith.addf %226, %227 : vector<1x128xf32>
    %229 = arith.negf %228 : vector<1x128xf32>
    %230 = math.exp %229 : vector<1x128xf32>
    %cst_76 = arith.constant 1.000000e+00 : f32
    %231 = vector.broadcast %cst_76 : f32 to vector<1x128xf32>
    %232 = arith.addf %231, %230 : vector<1x128xf32>
    %233 = arith.divf %231, %232 : vector<1x128xf32>
    %234 = vector.extract_strided_slice %217 {offsets = [0, 256], sizes = [1, 128], strides = [1, 1]} : vector<1x384xf32> to vector<1x128xf32>
    %235 = vector.extract_strided_slice %215 {offsets = [0, 256], sizes = [1, 128], strides = [1, 1]} : vector<1x384xf32> to vector<1x128xf32>
    %236 = arith.mulf %225, %235 : vector<1x128xf32>
    %237 = arith.addf %234, %236 : vector<1x128xf32>
    %238 = math.tanh %237 : vector<1x128xf32>
    %cst_77 = arith.constant 1.000000e+00 : f32
    %239 = vector.broadcast %cst_77 : f32 to vector<1x128xf32>
    %240 = arith.subf %239, %233 : vector<1x128xf32>
    %241 = arith.mulf %240, %238 : vector<1x128xf32>
    %242 = arith.mulf %233, %209 : vector<1x128xf32>
    %243 = arith.addf %241, %242 : vector<1x128xf32>
    %244 = arith.index_cast %c6_i32 : i32 to index
    %c0_78 = arith.constant 0 : index
    %245 = vector.load %arg6[%244, %c0_78] : memref<8x128xf32, #tpu.memory_space<vmem>>, vector<1x128xf32>
    tpu.vector_store %arg6[%244, %c0_78], %243 {strides = array<i32>} : memref<8x128xf32, #tpu.memory_space<vmem>>, vector<1x128xf32>,
    %c7_i32 = arith.constant 7 : i32
    %c0_79 = arith.constant 0 : index
    %c0_80 = arith.constant 0 : index
    %246 = vector.load %arg2[%c0_79, %c0_80] : memref<128x384xf32, #tpu.memory_space<vmem>>, vector<128x384xf32>
    %cst_81 = arith.constant dense<0.000000e+00> : vector<1x384xf32>
    %247 = tpu.matmul %243, %246, %cst_81 {dimension_numbers = #tpu.dot_dimension_numbers<[1], [0], [0], [1], [0, 0, 1, 1], [], []>} : vector<1x128xf32>, vector<128x384xf32>, vector<1x384xf32> -> vector<1x384xf32>
    %c0_82 = arith.constant 0 : index
    %c0_83 = arith.constant 0 : index
    %248 = vector.load %arg4[%c0_82, %c0_83] : memref<1x384xf32, #tpu.memory_space<vmem>>, vector<1x384xf32>
    %249 = arith.addf %247, %248 : vector<1x384xf32>
    %250 = arith.index_cast %c7_i32 : i32 to index
    %c0_84 = arith.constant 0 : index
    %251 = vector.load %arg7[%250, %c0_84] : memref<8x384xf32, #tpu.memory_space<vmem>>, vector<1x384xf32>
    %252 = vector.extract_strided_slice %251 {offsets = [0, 0], sizes = [1, 128], strides = [1, 1]} : vector<1x384xf32> to vector<1x128xf32>
    %253 = vector.extract_strided_slice %249 {offsets = [0, 0], sizes = [1, 128], strides = [1, 1]} : vector<1x384xf32> to vector<1x128xf32>
    %254 = arith.addf %252, %253 : vector<1x128xf32>
    %255 = arith.negf %254 : vector<1x128xf32>
    %256 = math.exp %255 : vector<1x128xf32>
    %cst_85 = arith.constant 1.000000e+00 : f32
    %257 = vector.broadcast %cst_85 : f32 to vector<1x128xf32>
    %258 = arith.addf %257, %256 : vector<1x128xf32>
    %259 = arith.divf %257, %258 : vector<1x128xf32>
    %260 = vector.extract_strided_slice %251 {offsets = [0, 128], sizes = [1, 128], strides = [1, 1]} : vector<1x384xf32> to vector<1x128xf32>
    %261 = vector.extract_strided_slice %249 {offsets = [0, 128], sizes = [1, 128], strides = [1, 1]} : vector<1x384xf32> to vector<1x128xf32>
    %262 = arith.addf %260, %261 : vector<1x128xf32>
    %263 = arith.negf %262 : vector<1x128xf32>
    %264 = math.exp %263 : vector<1x128xf32>
    %cst_86 = arith.constant 1.000000e+00 : f32
    %265 = vector.broadcast %cst_86 : f32 to vector<1x128xf32>
    %266 = arith.addf %265, %264 : vector<1x128xf32>
    %267 = arith.divf %265, %266 : vector<1x128xf32>
    %268 = vector.extract_strided_slice %251 {offsets = [0, 256], sizes = [1, 128], strides = [1, 1]} : vector<1x384xf32> to vector<1x128xf32>
    %269 = vector.extract_strided_slice %249 {offsets = [0, 256], sizes = [1, 128], strides = [1, 1]} : vector<1x384xf32> to vector<1x128xf32>
    %270 = arith.mulf %259, %269 : vector<1x128xf32>
    %271 = arith.addf %268, %270 : vector<1x128xf32>
    %272 = math.tanh %271 : vector<1x128xf32>
    %cst_87 = arith.constant 1.000000e+00 : f32
    %273 = vector.broadcast %cst_87 : f32 to vector<1x128xf32>
    %274 = arith.subf %273, %267 : vector<1x128xf32>
    %275 = arith.mulf %274, %272 : vector<1x128xf32>
    %276 = arith.mulf %267, %243 : vector<1x128xf32>
    %277 = arith.addf %275, %276 : vector<1x128xf32>
    %278 = arith.index_cast %c7_i32 : i32 to index
    %c0_88 = arith.constant 0 : index
    %279 = vector.load %arg6[%278, %c0_88] : memref<8x128xf32, #tpu.memory_space<vmem>>, vector<1x128xf32>
    tpu.vector_store %arg6[%278, %c0_88], %277 {strides = array<i32>} : memref<8x128xf32, #tpu.memory_space<vmem>>, vector<1x128xf32>,
    %c8_i32 = arith.constant 8 : i32
    return
  }
}

</mosaic_0001>

<bundles_post_ra>
// kernel: tpu_custom_call.1
= control target key start
LH: loop header
LB: loop body
LE: loop exit
PB: predicated region body
PF: predicated region fallthrough
CT: control target
= control target key end

     0   :  { %11 = vsyncpa [#allocation4], 0  ;;  %s3733_s0 = inlined_call_operand.hbm [shape: f32[8,128], index: 0, kind: input, shape index: {}]   ;;  %s3734_s1 = inlined_call_operand.hbm [shape: f32[128,384], index: 1, kind: input, shape index: {}]   ;;  %s3735_s2 = inlined_call_operand.hbm [shape: f32[128,384], index: 2, kind: input, shape index: {}]   ;;  %s3736_s3 = inlined_call_operand.vmem [shape: f32[1,384], index: 3, kind: input, shape index: {}]   ;;  %s3737_s4 = inlined_call_operand.vmem [shape: f32[1,384], index: 4, kind: input, shape index: {}]   ;;  %s3738_s5 = inlined_call_operand.vmem [shape: f32[1,128], index: 5, kind: input, shape index: {}]   ;;  %s3739_s6 = inlined_call_operand.hbm [shape: f32[8,128], index: 6, kind: output, shape index: {}]  }
   0x1   :  { %12 = vsyncpa [#allocation7], 0 }
   0x2   :  { %13 = vsyncpa [#allocation5], 0  ;;  %s2827_s21 = smov [#allocation6]  }
   0x3   :  { %s29_s22 = sshll.u32 %s2827_s21, 4  ;;  %s30_s22 = int_to_ptr.vmem [resolvable:$true] %s29_s22 }
   0x4   :  { %s2749_s23 = scalar_lea.vmem %s30_s22, 6144  ;;  %p2754_p1 = scmp.lt.s32.totalorder %s30_s22, %s30_s22 }
   0x5   :  { %p2750_p0 = scmp.ne.s32.totalorder %s30_s22, %s2749_s23  ;;  %p2755_p2 = scmp.lt.s32.totalorder %s2749_s23, %s2749_s23 }
   0x7   :  { %p2756_p3 = por %p2755_p2, %p2754_p1 }
   0x9   :  { %p2757_p4 = pnand %p2756_p3, %p2750_p0 }
   0xb   :  { %2760 = shalt.err (!%p2757_p4)
}
   0xc   :  { %s2828_s24 = smov 384   ;;  %s2829_s25 = smov 24  }
   0xd   :  { %35 = dma.hbm_to_vmem [thread:$0]  %s3734_s1, 6144, %s30_s22, [#allocation7], %s2828_s24, %s2828_s24, %s2829_s25  }
   0xe   :  { %s2830_s28 = smov [#allocation3]   ;;  %s2831_s30 = smov [#allocation8]  }
   0xf   :  { %s20_s29 = sshll.u32 %s2830_s28, 4  ;;  %s41_s7 = sshll.u32 %s2831_s30, 4  ;;  %s21_s29 = int_to_ptr.vmem [resolvable:$true] %s20_s29  ;;  %s42_s7 = int_to_ptr.vmem [resolvable:$true] %s41_s7 }
  0x10   :  { %s2769_s8 = scalar_lea.vmem %s21_s29, 128  ;;  %p2774_p6 = scmp.lt.s32.totalorder %s21_s29, %s21_s29 }
  0x11   :  { %p2770_p5 = scmp.ne.s32.totalorder %s21_s29, %s2769_s8  ;;  %p2775_p7 = scmp.lt.s32.totalorder %s2769_s8, %s2769_s8 }
  0x13   :  { %p2776_p8 = por %p2775_p7, %p2774_p6 }
  0x15   :  { %p2777_p9 = pnand %p2776_p8, %p2770_p5 }
  0x17   :  { %2780 = shalt.err (!%p2777_p9)
}
  0x18   :  { %23 = dma.hbm_to_vmem [thread:$0]  %s3733_s0, 128, %s21_s29, [#allocation4]  }
  0x19   :  { %s2789_s11 = scalar_lea.vmem %s42_s7, 6144  ;;  %p2794_p11 = scmp.lt.s32.totalorder %s42_s7, %s42_s7 }
  0x1a   :  { %p2790_p10 = scmp.ne.s32.totalorder %s42_s7, %s2789_s11  ;;  %p2795_p12 = scmp.lt.s32.totalorder %s2789_s11, %s2789_s11 }
  0x1c   :  { %p2796_p13 = por %p2795_p12, %p2794_p11 }
  0x1e   :  { %p2797_p0 = pnand %p2796_p13, %p2790_p10 }
  0x20   :  { %2800 = shalt.err (!%p2797_p0)
}
  0x21   :  { %47 = dma.hbm_to_vmem [thread:$0]  %s3735_s2, 6144, %s42_s7, [#allocation7], %s2828_s24, %s2828_s24, %s2829_s25  }
  0x22   :  { %2821 = dma.done.wait [#allocation4], 128  }
  0x23   :  { %2822 = vsyncadd [#allocation4], 4294967168 }
  0x24   :  { %2823 = dma.done.wait [#allocation7], 12288  }
  0x25   :  { %2824 = vsyncadd [#allocation7], 4294955008  ;;  %v3740_v0 = vmov 0.0   ;;  %vm2833_vm0 = vmmov 0   ;;  %v110_v1 = vld [vmem:[#allocation6 + $0x170] sm:$0xff]  ;;  %v109_v2 = vld [vmem:[#allocation6 + $0x168] sm:$0xff] }
  0x26   :  { %2338 = vmatprep.subr.mxu1 %v3740_v0  ;;  %193 = vmatprep.mubr.f32.mxu0 %v3740_v0  ;;  %v107_v3 = vld [vmem:[#allocation6 + $0x158] sm:$0xff]  ;;  %v106_v4 = vld [vmem:[#allocation6 + $0x150] sm:$0xff]  ;;  %v104_v6 = vld [vmem:[#allocation6 + $0x140] sm:$0xff] }
  0x27   :  { %2370 = vmatprep.mubr.msk.f32.mxu1 %vm2833_vm0, %v3740_v0  ;;  %129 = vmatprep.subr.mxu0 %v110_v1  ;;  %v111_v5 = vld [vmem:[#allocation6 + $0x178] sm:$0xff]  ;;  %v108_v7 = vld [vmem:[#allocation6 + $0x160] sm:$0xff]  ;;  %v105_v9 = vld [vmem:[#allocation6 + $0x148] sm:$0xff] }
  0x28   :  { %130 = vmatpush1.msra.mxu0 %v109_v2  ;;  %2339 = vmatpush3.msra.mxu1 %v111_v5  ;;  %v103_v8 = vld [vmem:[#allocation6 + $0x138] sm:$0xff]  ;;  %v101_v10 = vld [vmem:[#allocation6 + $0x128] sm:$0xff]  ;;  %v100_v11 = vld [vmem:[#allocation6 + $0x120] sm:$0xff] }
  0x29   :  { %131 = vmatprep.subr.mxu0 %v107_v3  ;;  %2340 = vmatprep.subr.mxu1 %v3740_v0  ;;  %v102_v12 = vld [vmem:[#allocation6 + $0x130] sm:$0xff]  ;;  %v97_v14 = vld [vmem:[#allocation6 + $0x108] sm:$0xff]  ;;  %v99_v15 = vld [vmem:[#allocation6 + $0x118] sm:$0xff] }
  0x2a   :  { %132 = vmatpush1.msra.mxu0 %v106_v4  ;;  %2341 = vmatpush3.msra.mxu1 %v108_v7  ;;  %v98_v13 = vld [vmem:[#allocation6 + $0x110] sm:$0xff]  ;;  %v95_v16 = vld [vmem:[#allocation6 + $0xf8] sm:$0xff]  ;;  %v96_v18 = vld [vmem:[#allocation6 + $0x100] sm:$0xff] }
  0x2b   :  { %133 = vmatprep.subr.mxu0 %v104_v6  ;;  %2342 = vmatprep.subr.mxu1 %v3740_v0  ;;  %v94_v17 = vld [vmem:[#allocation6 + $0xf0] sm:$0xff]  ;;  %v92_v19 = vld [vmem:[#allocation6 + $0xe0] sm:$0xff]  ;;  %v91_v20 = vld [vmem:[#allocation6 + $0xd8] sm:$0xff] }
  0x2c   :  { %134 = vmatpush1.msra.mxu0 %v103_v8  ;;  %2343 = vmatpush3.msra.mxu1 %v105_v9  ;;  %v93_v21 = vld [vmem:[#allocation6 + $0xe8] sm:$0xff]  ;;  %v88_v23 = vld [vmem:[#allocation6 + $0xc0] sm:$0xff]  ;;  %v90_v24 = vld [vmem:[#allocation6 + $0xd0] sm:$0xff] }
  0x2d   :  { %135 = vmatprep.subr.mxu0 %v101_v10  ;;  %2344 = vmatprep.subr.mxu1 %v3740_v0  ;;  %v89_v22 = vld [vmem:[#allocation6 + $0xc8] sm:$0xff]  ;;  %v86_v25 = vld [vmem:[#allocation6 + $0xb0] sm:$0xff]  ;;  %v87_v27 = vld [vmem:[#allocation6 + $0xb8] sm:$0xff] }
  0x2e   :  { %136 = vmatpush1.msra.mxu0 %v100_v11  ;;  %2345 = vmatpush3.msra.mxu1 %v102_v12  ;;  %v85_v26 = vld [vmem:[#allocation6 + $0xa8] sm:$0xff]  ;;  %v83_v28 = vld [vmem:[#allocation6 + $0x98] sm:$0xff]  ;;  %v82_v29 = vld [vmem:[#allocation6 + $0x90] sm:$0xff] }
  0x2f   :  { %137 = vmatprep.subr.mxu0 %v98_v13  ;;  %2346 = vmatprep.subr.mxu1 %v3740_v0  ;;  %v84_v30 = vld [vmem:[#allocation6 + $0xa0] sm:$0xff]  ;;  %v79_v32 = vld [vmem:[#allocation6 + $0x78] sm:$0xff]  ;;  %v81_v33 = vld [vmem:[#allocation6 + $0x88] sm:$0xff] }
  0x30   :  { %138 = vmatpush1.msra.mxu0 %v97_v14  ;;  %2347 = vmatpush3.msra.mxu1 %v99_v15  ;;  %v80_v31 = vld [vmem:[#allocation6 + $0x80] sm:$0xff]  ;;  %v77_v34 = vld [vmem:[#allocation6 + $0x68] sm:$0xff]  ;;  %v78_v36 = vld [vmem:[#allocation6 + $0x70] sm:$0xff] }
  0x31   :  { %139 = vmatprep.subr.mxu0 %v95_v16  ;;  %2348 = vmatprep.subr.mxu1 %v3740_v0  ;;  %v76_v35 = vld [vmem:[#allocation6 + $0x60] sm:$0xff]  ;;  %v74_v37 = vld [vmem:[#allocation6 + $0x50] sm:$0xff]  ;;  %v73_v38 = vld [vmem:[#allocation6 + $0x48] sm:$0xff] }
  0x32   :  { %140 = vmatpush1.msra.mxu0 %v94_v17  ;;  %2349 = vmatpush3.msra.mxu1 %v96_v18  ;;  %v75_v39 = vld [vmem:[#allocation6 + $0x58] sm:$0xff]  ;;  %v70_v41 = vld [vmem:[#allocation6 + $0x30] sm:$0xff]  ;;  %v72_v42 = vld [vmem:[#allocation6 + $0x40] sm:$0xff] }
  0x33   :  { %141 = vmatprep.subr.mxu0 %v92_v19  ;;  %2350 = vmatprep.subr.mxu1 %v3740_v0  ;;  %v71_v40 = vld [vmem:[#allocation6 + $0x38] sm:$0xff]  ;;  %v68_v43 = vld [vmem:[#allocation6 + $0x20] sm:$0xff]  ;;  %v69_v45 = vld [vmem:[#allocation6 + $0x28] sm:$0xff] }
  0x34   :  { %142 = vmatpush1.msra.mxu0 %v91_v20  ;;  %2351 = vmatpush3.msra.mxu1 %v93_v21  ;;  %v67_v44 = vld [vmem:[#allocation6 + $0x18] sm:$0xff]  ;;  %v65_v46 = vld [vmem:[#allocation6 + $0x8] sm:$0xff]  ;;  %v64_v47 = vld [vmem:[#allocation6] sm:$0xff] }
  0x35   :  { %143 = vmatprep.subr.mxu0 %v89_v22  ;;  %2352 = vmatprep.subr.mxu1 %v3740_v0  ;;  %v66_v48 = vld [vmem:[#allocation6 + $0x10] sm:$0xff]  ;;  %v63_v49 = vld [vmem:[#allocation3] sm:$0xff]  ;;  %v2900_v51 = vld [vmem:[#allocation8 + $0x168] sm:$0xff] }
  0x36   :  { %144 = vmatpush1.msra.mxu0 %v88_v23  ;;  %2353 = vmatpush3.msra.mxu1 %v90_v24  ;;  %v2897_v50 = vld [vmem:[#allocation8 + $0x170] sm:$0xff]  ;;  %v2902_v52 = vld [vmem:[#allocation8 + $0x158] sm:$0xff]  ;;  %v2908_v54 = vld [vmem:[#allocation8 + $0x140] sm:$0xff] }
  0x37   :  { %145 = vmatprep.subr.mxu0 %v86_v25  ;;  %2354 = vmatprep.subr.mxu1 %v3740_v0  ;;  %3781 = vst [vmem:[#allocation13_spill] sm:$0xff] %v2897_v50  ;;  %v2905_v53 = vld [vmem:[#allocation8 + $0x150] sm:$0xff]  ;;  %v2910_v55 = vld [vmem:[#allocation8 + $0x178] sm:$0xff]  ;;  %v2917_v57 = vld [vmem:[#allocation8 + $0x128] sm:$0xff] }
  0x38   :  { %146 = vmatpush1.msra.mxu0 %v85_v26  ;;  %2355 = vmatpush3.msra.mxu1 %v87_v27  ;;  %v2913_v56 = vld [vmem:[#allocation8 + $0x138] sm:$0xff]  ;;  %v2920_v58 = vld [vmem:[#allocation8 + $0x160] sm:$0xff]  ;;  %v2927_v60 = vld [vmem:[#allocation8 + $0x110] sm:$0xff] }
  0x39   :  { %147 = vmatprep.subr.mxu0 %v83_v28  ;;  %2356 = vmatprep.subr.mxu1 %v3740_v0  ;;  %v2923_v59 = vld [vmem:[#allocation8 + $0x120] sm:$0xff]  ;;  %v2930_v61 = vld [vmem:[#allocation8 + $0x148] sm:$0xff]  ;;  %v2937_v63 = vld [vmem:[#allocation8 + $0xf8] sm:$0xff] }
  0x3a   :  { %148 = vmatpush1.msra.mxu0 %v82_v29  ;;  %2357 = vmatpush3.msra.mxu1 %v84_v30  ;;  %v2933_v62 = vld [vmem:[#allocation8 + $0x108] sm:$0xff]  ;;  %v2940_v1 = vld [vmem:[#allocation8 + $0x130] sm:$0xff]  ;;  %v2947_v3 = vld [vmem:[#allocation8 + $0xe0] sm:$0xff] }
  0x3b   :  { %149 = vmatprep.subr.mxu0 %v80_v31  ;;  %2358 = vmatprep.subr.mxu1 %v3740_v0  ;;  %v2943_v2 = vld [vmem:[#allocation8 + $0xf0] sm:$0xff]  ;;  %v2950_v4 = vld [vmem:[#allocation8 + $0x118] sm:$0xff]  ;;  %v2957_v6 = vld [vmem:[#allocation8 + $0xc8] sm:$0xff] }
  0x3c   :  { %150 = vmatpush1.msra.mxu0 %v79_v32  ;;  %2359 = vmatpush3.msra.mxu1 %v81_v33  ;;  %v2953_v5 = vld [vmem:[#allocation8 + $0xd8] sm:$0xff]  ;;  %v2960_v7 = vld [vmem:[#allocation8 + $0x100] sm:$0xff]  ;;  %v2967_v9 = vld [vmem:[#allocation8 + $0xb0] sm:$0xff] }
  0x3d   :  { %151 = vmatprep.subr.mxu0 %v77_v34  ;;  %2360 = vmatprep.subr.mxu1 %v3740_v0  ;;  %v2963_v8 = vld [vmem:[#allocation8 + $0xc0] sm:$0xff]  ;;  %v2970_v10 = vld [vmem:[#allocation8 + $0xe8] sm:$0xff]  ;;  %v2977_v12 = vld [vmem:[#allocation8 + $0x98] sm:$0xff] }
  0x3e   :  { %152 = vmatpush1.msra.mxu0 %v76_v35  ;;  %2361 = vmatpush3.msra.mxu1 %v78_v36  ;;  %v2973_v11 = vld [vmem:[#allocation8 + $0xa8] sm:$0xff]  ;;  %v2980_v13 = vld [vmem:[#allocation8 + $0xd0] sm:$0xff]  ;;  %v2987_v15 = vld [vmem:[#allocation8 + $0x80] sm:$0xff]  ;;  %v114_v36 = vlaneseq }
  0x3f   :  { %153 = vmatprep.subr.mxu0 %v74_v37  ;;  %2362 = vmatprep.subr.mxu1 %v3740_v0  ;;  %v2983_v14 = vld [vmem:[#allocation8 + $0x90] sm:$0xff]  ;;  %v2990_v16 = vld [vmem:[#allocation8 + $0xb8] sm:$0xff]  ;;  %v2997_v18 = vld [vmem:[#allocation8 + $0x68] sm:$0xff] }
  0x40   :  { %154 = vmatpush1.msra.mxu0 %v73_v38  ;;  %2363 = vmatpush3.msra.mxu1 %v75_v39  ;;  %v2993_v17 = vld [vmem:[#allocation8 + $0x78] sm:$0xff]  ;;  %v3000_v19 = vld [vmem:[#allocation8 + $0xa0] sm:$0xff]  ;;  %v3007_v21 = vld [vmem:[#allocation8 + $0x50] sm:$0xff]  ;;  %v115_v37 = vshrl.u32 %v114_v36, 7 }
  0x41   :  { %155 = vmatprep.subr.mxu0 %v71_v40  ;;  %2364 = vmatprep.subr.mxu1 %v3740_v0  ;;  %v3003_v20 = vld [vmem:[#allocation8 + $0x60] sm:$0xff]  ;;  %v3010_v22 = vld [vmem:[#allocation8 + $0x88] sm:$0xff]  ;;  %v3017_v24 = vld [vmem:[#allocation8 + $0x38] sm:$0xff] }
  0x42   :  { %156 = vmatpush1.msra.mxu0 %v70_v41  ;;  %2365 = vmatpush3.msra.mxu1 %v72_v42  ;;  %v3013_v23 = vld [vmem:[#allocation8 + $0x48] sm:$0xff]  ;;  %v3020_v25 = vld [vmem:[#allocation8 + $0x70] sm:$0xff]  ;;  %v3027_v27 = vld [vmem:[#allocation8 + $0x20] sm:$0xff]  ;;  %v3137_v38 = vsub.s32 0, %v115_v37  ;;  %v3142_v40 = vsub.s32 2, %v115_v37  ;;  %v3144_v41 = vsub.s32 1, %v115_v37 }
  0x43   :  { %157 = vmatprep.subr.mxu0 %v68_v43  ;;  %2366 = vmatprep.subr.mxu1 %v3740_v0  ;;  %v3023_v26 = vld [vmem:[#allocation8 + $0x30] sm:$0xff]  ;;  %3783 = vst [vmem:[#allocation15_spill] sm:$0xff] %v3027_v27  ;;  %v3030_v28 = vld [vmem:[#allocation8 + $0x58] sm:$0xff]  ;;  %v3037_v30 = vld [vmem:[#allocation8 + $0x8] sm:$0xff] }
  0x44   :  { %158 = vmatpush1.msra.mxu0 %v67_v44  ;;  %2367 = vmatpush3.msra.mxu1 %v69_v45  ;;  %3782 = vst [vmem:[#allocation14_spill] sm:$0xff] %v3023_v26  ;;  %v3033_v29 = vld [vmem:[#allocation8 + $0x18] sm:$0xff]  ;;  %3785 = vst [vmem:[#allocation17_spill] sm:$0xff] %v3037_v30  ;;  %v3040_v31 = vld [vmem:[#allocation8 + $0x40] sm:$0xff] }
  0x45   :  { %159 = vmatprep.subr.mxu0 %v65_v46  ;;  %2368 = vmatprep.subr.mxu1 %v3740_v0  ;;  %3784 = vst [vmem:[#allocation16_spill] sm:$0xff] %v3033_v29  ;;  %3786 = vst [vmem:[#allocation18_spill] sm:$0xff] %v3040_v31  ;;  %v3043_v32 = vld [vmem:[#allocation8] sm:$0xff]  ;;  %v3053_v34 = vld [vmem:[#allocation8 + $0x28] sm:$0xff] }
  0x46   :  { %160 = vmatpush1.msra.mxu0 %v64_v47  ;;  %2369 = vmatpush3.msra.mxu1 %v66_v48  ;;  %3787 = vst [vmem:[#allocation19_spill] sm:$0xff] %v3043_v32  ;;  %v3050_v33 = vld [vmem:[%s3738_s5] sm:$0x1]  ;;  %3788 = vst [vmem:[#allocation20_spill] sm:$0xff] %v3053_v34  ;;  %v3059_v35 = vld [vmem:[#allocation8 + $0x10] sm:$0xff] }
  0x47   :  { %194 = vmatmul.mubr.f32.vlgmr.msra.gmra.mxu0 %v63_v49  ;;  %339 = vmatprep.subr.mxu0 %v2897_v50  ;;  %3789 = vst [vmem:[#allocation21_spill] sm:$0xff] %v3059_v35  ;;  %3790 = vst [vmem:[#allocation22_spill] sm:$0xff] %v3137_v38  ;;  %v112_v39 = vld [vmem:[%s3736_s3] sm:$0x7] }
  0x48   :  { %340 = vmatpush1.msra.mxu0 %v2900_v51  ;;  %2371 = vmatmul.mubr.f32.vlgmr.msra.gmra.mxu1 %v63_v49  ;;  %3791 = vst [vmem:[#allocation23_spill] sm:$0xff] %v3144_v41  ;;  %v117_v42 = vrot.slane %v112_v39, %v3137_v38  ;;  %v125_v43 = vrot.slane %v112_v39, %v3142_v40  ;;  %v322_v37 = vld [vmem:[%s3737_s4] sm:$0x7] }
  0x49   :  { %341 = vmatprep.subr.mxu0 %v2902_v52  ;;  %403 = vmatprep.mubr.f32.mxu0 %v3740_v0  ;;  %v121_v44 = vrot.slane %v112_v39, %v3144_v41  ;;  %v331_v39 = vrot.slane %v322_v37, %v3144_v41 }
  0x4a   :  { %342 = vmatpush1.msra.mxu0 %v2905_v53  ;;  %2373 = vmatprep.subr.mxu1 %v3740_v0 }
  0x4b   :  { %343 = vmatprep.subr.mxu0 %v2908_v54  ;;  %2374 = vmatpush3.msra.mxu1 %v2910_v55 }
  0x4c   :  { %344 = vmatpush1.msra.mxu0 %v2913_v56  ;;  %2375 = vmatprep.subr.mxu1 %v3740_v0 }
  0x4d   :  { %345 = vmatprep.subr.mxu0 %v2917_v57  ;;  %2376 = vmatpush3.msra.mxu1 %v2920_v58 }
  0x4e   :  { %346 = vmatpush1.msra.mxu0 %v2923_v59  ;;  %2377 = vmatprep.subr.mxu1 %v3740_v0 }
  0x4f   :  { %347 = vmatprep.subr.mxu0 %v2927_v60  ;;  %2378 = vmatpush3.msra.mxu1 %v2930_v61 }
  0x50   :  { %348 = vmatpush1.msra.mxu0 %v2933_v62  ;;  %2379 = vmatprep.subr.mxu1 %v3740_v0 }
  0x51   :  { %349 = vmatprep.subr.mxu0 %v2937_v63  ;;  %2380 = vmatpush3.msra.mxu1 %v2940_v1 }
  0x52   :  { %350 = vmatpush1.msra.mxu0 %v2943_v2  ;;  %2381 = vmatprep.subr.mxu1 %v3740_v0 }
  0x53   :  { %351 = vmatprep.subr.mxu0 %v2947_v3  ;;  %2382 = vmatpush3.msra.mxu1 %v2950_v4 }
  0x54   :  { %352 = vmatpush1.msra.mxu0 %v2953_v5  ;;  %2383 = vmatprep.subr.mxu1 %v3740_v0 }
  0x55   :  { %353 = vmatprep.subr.mxu0 %v2957_v6  ;;  %2384 = vmatpush3.msra.mxu1 %v2960_v7 }
  0x56   :  { %354 = vmatpush1.msra.mxu0 %v2963_v8  ;;  %2385 = vmatprep.subr.mxu1 %v3740_v0 }
  0x57   :  { %355 = vmatprep.subr.mxu0 %v2967_v9  ;;  %2386 = vmatpush3.msra.mxu1 %v2970_v10 }
  0x58   :  { %356 = vmatpush1.msra.mxu0 %v2973_v11  ;;  %2387 = vmatprep.subr.mxu1 %v3740_v0 }
  0x59   :  { %357 = vmatprep.subr.mxu0 %v2977_v12  ;;  %2388 = vmatpush3.msra.mxu1 %v2980_v13 }
  0x5a   :  { %358 = vmatpush1.msra.mxu0 %v2983_v14  ;;  %2389 = vmatprep.subr.mxu1 %v3740_v0 }
  0x5b   :  { %359 = vmatprep.subr.mxu0 %v2987_v15  ;;  %2390 = vmatpush3.msra.mxu1 %v2990_v16 }
  0x5c   :  { %360 = vmatpush1.msra.mxu0 %v2993_v17  ;;  %2391 = vmatprep.subr.mxu1 %v3740_v0 }
  0x5d   :  { %361 = vmatprep.subr.mxu0 %v2997_v18  ;;  %2392 = vmatpush3.msra.mxu1 %v3000_v19 }
  0x5e   :  { %362 = vmatpush1.msra.mxu0 %v3003_v20  ;;  %2393 = vmatprep.subr.mxu1 %v3740_v0 }
  0x5f   :  { %363 = vmatprep.subr.mxu0 %v3007_v21  ;;  %2394 = vmatpush3.msra.mxu1 %v3010_v22 }
  0x60   :  { %364 = vmatpush1.msra.mxu0 %v3013_v23  ;;  %2395 = vmatprep.subr.mxu1 %v3740_v0 }
  0x61   :  { %365 = vmatprep.subr.mxu0 %v3017_v24  ;;  %2396 = vmatpush3.msra.mxu1 %v3020_v25 }
  0x62   :  { %366 = vmatpush1.msra.mxu0 %v3023_v26  ;;  %2397 = vmatprep.subr.mxu1 %v3740_v0 }
  0x63   :  { %367 = vmatprep.subr.mxu0 %v3027_v27  ;;  %2398 = vmatpush3.msra.mxu1 %v3030_v28 }
  0x64   :  { %368 = vmatpush1.msra.mxu0 %v3033_v29  ;;  %2399 = vmatprep.subr.mxu1 %v3740_v0 }
  0x65   :  { %369 = vmatprep.subr.mxu0 %v3037_v30  ;;  %2400 = vmatpush3.msra.mxu1 %v3040_v31 }
  0x66   :  { %370 = vmatpush1.msra.mxu0 %v3043_v32  ;;  %2401 = vmatprep.subr.mxu1 %v3740_v0 }
  0x67   :  { %404 = vmatmul.mubr.f32.vlgmr.msra.gmra.mxu0 %v3050_v33  ;;  %2402 = vmatpush3.msra.mxu1 %v3053_v34 }
  0x68   :  { %2403 = vmatprep.subr.mxu1 %v3740_v0  ;;  %2405 = vmatprep.mubr.msk.f32.mxu1 %vm2833_vm0, %v3740_v0 }
  0x69   :  { %2404 = vmatpush3.msra.mxu1 %v3059_v35  ;;  %573 = vmatprep.subr.mxu0 %v2897_v50 }
  0x6a   :  { %2406 = vmatmul.mubr.f32.vlgmr.msra.gmra.mxu1 %v3050_v33  ;;  %2408 = vmatprep.subr.mxu1 %v3740_v0 }
  0x6b   :  { %574 = vmatpush1.msra.mxu0 %v2900_v51  ;;  %2409 = vmatpush3.msra.mxu1 %v2910_v55 }
  0x6c   :  { %575 = vmatprep.subr.mxu0 %v2902_v52  ;;  %2410 = vmatprep.subr.mxu1 %v3740_v0 }
  0x6d   :  { %576 = vmatpush1.msra.mxu0 %v2905_v53  ;;  %2411 = vmatpush3.msra.mxu1 %v2920_v58 }
  0x6e   :  { %577 = vmatprep.subr.mxu0 %v2908_v54  ;;  %2412 = vmatprep.subr.mxu1 %v3740_v0 }
  0x6f   :  { %578 = vmatpush1.msra.mxu0 %v2913_v56  ;;  %2413 = vmatpush3.msra.mxu1 %v2930_v61 }
  0x70   :  { %579 = vmatprep.subr.mxu0 %v2917_v57  ;;  %2414 = vmatprep.subr.mxu1 %v3740_v0 }
  0x71   :  { %580 = vmatpush1.msra.mxu0 %v2923_v59  ;;  %2415 = vmatpush3.msra.mxu1 %v2940_v1 }
  0x72   :  { %581 = vmatprep.subr.mxu0 %v2927_v60  ;;  %2416 = vmatprep.subr.mxu1 %v3740_v0 }
  0x73   :  { %582 = vmatpush1.msra.mxu0 %v2933_v62  ;;  %2417 = vmatpush3.msra.mxu1 %v2950_v4 }
  0x74   :  { %583 = vmatprep.subr.mxu0 %v2937_v63  ;;  %2418 = vmatprep.subr.mxu1 %v3740_v0 }
  0x75   :  { %584 = vmatpush1.msra.mxu0 %v2943_v2  ;;  %2419 = vmatpush3.msra.mxu1 %v2960_v7 }
  0x76   :  { %585 = vmatprep.subr.mxu0 %v2947_v3  ;;  %2420 = vmatprep.subr.mxu1 %v3740_v0 }
  0x77   :  { %586 = vmatpush1.msra.mxu0 %v2953_v5  ;;  %2421 = vmatpush3.msra.mxu1 %v2970_v10 }
  0x78   :  { %587 = vmatprep.subr.mxu0 %v2957_v6  ;;  %2422 = vmatprep.subr.mxu1 %v3740_v0 }
  0x79   :  { %588 = vmatpush1.msra.mxu0 %v2963_v8  ;;  %2423 = vmatpush3.msra.mxu1 %v2980_v13 }
  0x7a   :  { %589 = vmatprep.subr.mxu0 %v2967_v9  ;;  %2424 = vmatprep.subr.mxu1 %v3740_v0 }
  0x7b   :  { %590 = vmatpush1.msra.mxu0 %v2973_v11  ;;  %2425 = vmatpush3.msra.mxu1 %v2990_v16 }
  0x7c   :  { %591 = vmatprep.subr.mxu0 %v2977_v12  ;;  %2426 = vmatprep.subr.mxu1 %v3740_v0 }
  0x7d   :  { %592 = vmatpush1.msra.mxu0 %v2983_v14  ;;  %2427 = vmatpush3.msra.mxu1 %v3000_v19 }
  0x7e   :  { %593 = vmatprep.subr.mxu0 %v2987_v15  ;;  %2428 = vmatprep.subr.mxu1 %v3740_v0 }
  0x7f   :  { %594 = vmatpush1.msra.mxu0 %v2993_v17  ;;  %2429 = vmatpush3.msra.mxu1 %v3010_v22 }
  0x80   :  { %595 = vmatprep.subr.mxu0 %v2997_v18  ;;  %2430 = vmatprep.subr.mxu1 %v3740_v0 }
  0x81   :  { %596 = vmatpush1.msra.mxu0 %v3003_v20  ;;  %2431 = vmatpush3.msra.mxu1 %v3020_v25 }
  0x82   :  { %597 = vmatprep.subr.mxu0 %v3007_v21  ;;  %2432 = vmatprep.subr.mxu1 %v3740_v0 }
  0x83   :  { %598 = vmatpush1.msra.mxu0 %v3013_v23  ;;  %2433 = vmatpush3.msra.mxu1 %v3030_v28 }
  0x84   :  { %599 = vmatprep.subr.mxu0 %v3017_v24  ;;  %2434 = vmatprep.subr.mxu1 %v3740_v0 }
  0x85   :  { %600 = vmatpush1.msra.mxu0 %v3023_v26  ;;  %2435 = vmatpush3.msra.mxu1 %v3040_v31 }
  0x86   :  { %601 = vmatprep.subr.mxu0 %v3027_v27  ;;  %2436 = vmatprep.subr.mxu1 %v3740_v0 }
  0x87   :  { %602 = vmatpush1.msra.mxu0 %v3033_v29  ;;  %2437 = vmatpush3.msra.mxu1 %v3053_v34 }
  0x88   :  { %603 = vmatprep.subr.mxu0 %v3037_v30  ;;  %2438 = vmatprep.subr.mxu1 %v3740_v0 }
  0x89   :  { %604 = vmatpush1.msra.mxu0 %v3043_v32  ;;  %637 = vmatprep.mubr.f32.mxu0 %v3740_v0 }
  0x8a   :  { %2439 = vmatpush3.msra.mxu1 %v3059_v35  ;;  %2440 = vmatprep.mubr.msk.f32.mxu1 %vm2833_vm0, %v3740_v0 }
  0x8b   :  { %808 = vmatprep.subr.mxu0 %v2897_v50  ;;  %2443 = vmatprep.subr.mxu1 %v3740_v0  ;;  %v327_v50 = vrot.slane %v322_v37, %v3137_v38  ;;  %v335_v38 = vrot.slane %v322_v37, %v3142_v40  ;;  %v3799_v37 = vld [vmem:[#allocation13_spill] sm:$0xff] }
 0x107   :  { %v195_v45 = vpop.f32.mrf.mxu0 }
 0x108   :  { %v196_v46 = vadd.f32 %v195_v45, %v117_v42  ;;  %v266_v47 = vpop.f32.mrf.mxu1 }
 0x109   :  { %v197_v48 = vpop.f32.mrf.mxu0  ;;  %v267_v49 = vadd.f32 %v266_v47, %v125_v43 }
 0x10a   :  { %270 = vst [vmem:[#allocation2] sm:$0xff] %v196_v46  ;;  %v198_v36 = vadd.f32 %v197_v48, %v121_v44  ;;  %v2372_v0 = vpop.f32.mrf.mxu1 }
 0x10b   :  { %272 = vst [vmem:[#allocation2 + $0x10] sm:$0xff] %v267_v49 }
 0x10c   :  { %271 = vst [vmem:[#allocation2 + $0x8] sm:$0xff] %v198_v36 }
 0x113   :  { %v480_v30 = vld [vmem:[#allocation2] ss:$8 sm:$0x7] }
 0x114   :  { %v489_v0 = vrot.slane %v480_v30, 1  ;;  %v499_v27 = vrot.slane %v480_v30, 2 }
 0x127   :  { %v405_v35 = vpop.f32.mrf.mxu0 }
 0x128   :  { %v406_v32 = vadd.f32 %v405_v35, %v327_v50 }
 0x129   :  { %v407_v42 = vpop.f32.mrf.mxu0 }
 0x12a   :  { %v481_v45 = vadd.f32 %v480_v30, %v406_v32  ;;  %v476_v34 = vpop.f32.mrf.mxu1  ;;  %v408_v46 = vadd.f32 %v407_v42, %v331_v39  ;;  %v3794_v30 = vld [vmem:[#allocation16_spill] sm:$0xff] }
 0x12b   :  { %v477_v41 = vadd.f32 %v476_v34, %v335_v38  ;;  %v3796_v34 = vld [vmem:[#allocation17_spill] sm:$0xff]  ;;  %v3797_v38 = vld [vmem:[#allocation19_spill] sm:$0xff] }
 0x12c   :  { %v2169_v43 = vmul.f32 -1.442695, %v481_v45  ;;  %v2407_v44 = vpop.f32.mrf.mxu1  ;;  %v491_v47 = vadd.f32 %v489_v0, %v408_v46 }
 0x12e   :  { %2661 = vpow2.f32 %v2169_v43  ;;  %v2170_v48 = vmul.f32 -1.442695, %v491_v47  ;;  %v556_v47 = vld [vmem:[%s3737_s4] sm:$0x7] }
 0x130   :  { %2663 = vpow2.f32 %v2170_v48  ;;  %v3800_v48 = vld [vmem:[#allocation22_spill] sm:$0xff] }
 0x13b   :  { %v2662_v49 = vpop.eup %2661 }
 0x13c   :  { %v485_v36 = vadd.f32 1.0, %v2662_v49  ;;  %v561_v49 = vrot.slane %v556_v47, %v3800_v48 }
 0x13d   :  { %v2664_v50 = vpop.eup %2663 }
 0x13e   :  { %2665 = vrcp.f32 %v485_v36  ;;  %v495_v35 = vadd.f32 1.0, %v2664_v50 }
 0x140   :  { %2667 = vrcp.f32 %v495_v35 }
 0x14b   :  { %v2666_v29 = vpop.eup %2665 }
 0x14c   :  { %v498_v32 = vmul.f32 %v2666_v29, %v477_v41  ;;  %v3793_v29 = vld [vmem:[#allocation15_spill] sm:$0xff]  ;;  %v3798_v41 = vld [vmem:[#allocation21_spill] sm:$0xff] }
 0x14d   :  { %v2668_v39 = vpop.eup %2667 }
 0x14e   :  { %v501_v45 = vadd.f32 %v499_v27, %v498_v32  ;;  %v503_v42 = vsub.f32 1.0, %v2668_v39  ;;  %v505_v44 = vmul.f32 %v2668_v39, %v3050_v33  ;;  %v3792_v27 = vmov 0.0   ;;  %v3795_v33 = vld [vmem:[#allocation20_spill] sm:$0xff]  ;;  %v3801_v32 = vld [vmem:[#allocation23_spill] sm:$0xff] }
 0x14f   :  { %v715_v39 = vld [vmem:[#allocation2 + $0x1] ss:$8 sm:$0x7] }
 0x150   :  { %2669 = vtanh.f32 %v501_v45  ;;  %v565_v45 = vrot.slane %v556_v47, %v3801_v32 }
 0x15d   :  { %v2670_v43 = vpop.eup %2669 }
 0x15e   :  { %v504_v46 = vmul.f32 %v2670_v43, %v503_v42 }
 0x160   :  { %v3156_v0 = vadd.f32 %v505_v44, %v504_v46 }
 0x162   :  { %507 = vst [vmem:[#allocation9] sm:$0x1] %v3156_v0  ;;  %638 = vmatmul.mubr.f32.vlgmr.msra.gmra.mxu0 %v3156_v0  ;;  %2441 = vmatmul.mubr.f32.vlgmr.msra.gmra.mxu1 %v3156_v0 }
 0x163   :  { %809 = vmatpush1.msra.mxu0 %v2900_v51  ;;  %2444 = vmatpush3.msra.mxu1 %v2910_v55 }
 0x164   :  { %810 = vmatprep.subr.mxu0 %v2902_v52  ;;  %2445 = vmatprep.subr.mxu1 %v3792_v27 }
 0x165   :  { %811 = vmatpush1.msra.mxu0 %v2905_v53  ;;  %2446 = vmatpush3.msra.mxu1 %v2920_v58 }
 0x166   :  { %812 = vmatprep.subr.mxu0 %v2908_v54  ;;  %2447 = vmatprep.subr.mxu1 %v3792_v27 }
 0x167   :  { %813 = vmatpush1.msra.mxu0 %v2913_v56  ;;  %2448 = vmatpush3.msra.mxu1 %v2930_v61 }
 0x168   :  { %814 = vmatprep.subr.mxu0 %v2917_v57  ;;  %2449 = vmatprep.subr.mxu1 %v3792_v27 }
 0x169   :  { %815 = vmatpush1.msra.mxu0 %v2923_v59  ;;  %2450 = vmatpush3.msra.mxu1 %v2940_v1 }
 0x16a   :  { %816 = vmatprep.subr.mxu0 %v2927_v60  ;;  %2451 = vmatprep.subr.mxu1 %v3792_v27 }
 0x16b   :  { %817 = vmatpush1.msra.mxu0 %v2933_v62  ;;  %2452 = vmatpush3.msra.mxu1 %v2950_v4 }
 0x16c   :  { %818 = vmatprep.subr.mxu0 %v2937_v63  ;;  %2453 = vmatprep.subr.mxu1 %v3792_v27 }
 0x16d   :  { %819 = vmatpush1.msra.mxu0 %v2943_v2  ;;  %2454 = vmatpush3.msra.mxu1 %v2960_v7 }
 0x16e   :  { %820 = vmatprep.subr.mxu0 %v2947_v3  ;;  %2455 = vmatprep.subr.mxu1 %v3792_v27 }
 0x16f   :  { %821 = vmatpush1.msra.mxu0 %v2953_v5  ;;  %2456 = vmatpush3.msra.mxu1 %v2970_v10 }
 0x170   :  { %822 = vmatprep.subr.mxu0 %v2957_v6  ;;  %2457 = vmatprep.subr.mxu1 %v3792_v27 }
 0x171   :  { %823 = vmatpush1.msra.mxu0 %v2963_v8  ;;  %2458 = vmatpush3.msra.mxu1 %v2980_v13 }
 0x172   :  { %824 = vmatprep.subr.mxu0 %v2967_v9  ;;  %2459 = vmatprep.subr.mxu1 %v3792_v27 }
 0x173   :  { %825 = vmatpush1.msra.mxu0 %v2973_v11  ;;  %2460 = vmatpush3.msra.mxu1 %v2990_v16 }
 0x174   :  { %826 = vmatprep.subr.mxu0 %v2977_v12  ;;  %2461 = vmatprep.subr.mxu1 %v3792_v27 }
 0x175   :  { %827 = vmatpush1.msra.mxu0 %v2983_v14  ;;  %2462 = vmatpush3.msra.mxu1 %v3000_v19 }
 0x176   :  { %828 = vmatprep.subr.mxu0 %v2987_v15  ;;  %2463 = vmatprep.subr.mxu1 %v3792_v27 }
 0x177   :  { %829 = vmatpush1.msra.mxu0 %v2993_v17  ;;  %2464 = vmatpush3.msra.mxu1 %v3010_v22 }
 0x178   :  { %830 = vmatprep.subr.mxu0 %v2997_v18  ;;  %2465 = vmatprep.subr.mxu1 %v3792_v27 }
 0x179   :  { %831 = vmatpush1.msra.mxu0 %v3003_v20  ;;  %2466 = vmatpush3.msra.mxu1 %v3020_v25 }
 0x17a   :  { %832 = vmatprep.subr.mxu0 %v3007_v21  ;;  %2467 = vmatprep.subr.mxu1 %v3792_v27 }
 0x17b   :  { %833 = vmatpush1.msra.mxu0 %v3013_v23  ;;  %2468 = vmatpush3.msra.mxu1 %v3030_v28 }
 0x17c   :  { %834 = vmatprep.subr.mxu0 %v3017_v24  ;;  %2469 = vmatprep.subr.mxu1 %v3792_v27 }
 0x17d   :  { %835 = vmatpush1.msra.mxu0 %v3023_v26  ;;  %2470 = vmatpush3.msra.mxu1 %v3040_v31  ;;  %v734_v26 = vrot.slane %v715_v39, 2 }
 0x17e   :  { %836 = vmatprep.subr.mxu0 %v3793_v29  ;;  %2471 = vmatprep.subr.mxu1 %v3792_v27  ;;  %v569_v29 = vrot.slane %v556_v47, %v3142_v40  ;;  %v3334_v47 = vld [vmem:[#allocation8 + $0x150] sm:$0xff] }
 0x17f   :  { %837 = vmatpush1.msra.mxu0 %v3794_v30  ;;  %2472 = vmatpush3.msra.mxu1 %v3795_v33 }
 0x180   :  { %838 = vmatprep.subr.mxu0 %v3796_v34  ;;  %2473 = vmatprep.subr.mxu1 %v3792_v27 }
 0x181   :  { %839 = vmatpush1.msra.mxu0 %v3797_v38  ;;  %872 = vmatprep.mubr.f32.mxu0 %v3792_v27 }
 0x182   :  { %2474 = vmatpush3.msra.mxu1 %v3798_v41  ;;  %2475 = vmatprep.mubr.msk.f32.mxu1 %vm2833_vm0, %v3792_v27 }
 0x183   :  { %1043 = vmatprep.subr.mxu0 %v3799_v37  ;;  %2478 = vmatprep.subr.mxu1 %v3792_v27  ;;  %v724_v37 = vrot.slane %v715_v39, 1 }
 0x222   :  { %v639_v36 = vpop.f32.mrf.mxu0  ;;  %v710_v50 = vpop.f32.mrf.mxu1 }
 0x223   :  { %v640_v35 = vadd.f32 %v639_v36, %v561_v49  ;;  %v711_v36 = vadd.f32 %v710_v50, %v569_v29  ;;  %v3324_v29 = vld [vmem:[#allocation8 + $0x168] sm:$0xff]  ;;  %v3340_v50 = vld [vmem:[#allocation8 + $0x140] sm:$0xff] }
 0x224   :  { %v641_v42 = vpop.f32.mrf.mxu0  ;;  %v2442_v43 = vpop.f32.mrf.mxu1 }
 0x225   :  { %v716_v46 = vadd.f32 %v715_v39, %v640_v35  ;;  %v642_v41 = vadd.f32 %v641_v42, %v565_v45  ;;  %v3346_v39 = vld [vmem:[#allocation8 + $0x148] sm:$0xff] }
 0x227   :  { %v2171_v44 = vmul.f32 -1.442695, %v716_v46  ;;  %v726_v38 = vadd.f32 %v724_v37, %v642_v41  ;;  %v3350_v46 = vld [vmem:[#allocation8 + $0x128] sm:$0xff]  ;;  %v3356_v37 = vld [vmem:[#allocation8 + $0x130] sm:$0xff] }
 0x229   :  { %2671 = vpow2.f32 %v2171_v44  ;;  %v2172_v34 = vmul.f32 -1.442695, %v726_v38  ;;  %v3354_v44 = vld [vmem:[#allocation8 + $0x120] sm:$0xff] }
 0x22b   :  { %2673 = vpow2.f32 %v2172_v34 }
 0x236   :  { %v2672_v33 = vpop.eup %2671 }
 0x237   :  { %v720_v30 = vadd.f32 1.0, %v2672_v33  ;;  %v3330_v33 = vld [vmem:[#allocation8 + $0x158] sm:$0xff] }
 0x238   :  { %v2674_v48 = vpop.eup %2673 }
 0x239   :  { %2675 = vrcp.f32 %v720_v30  ;;  %v730_v49 = vadd.f32 1.0, %v2674_v48  ;;  %v3326_v30 = vld [vmem:[#allocation8 + $0x178] sm:$0xff]  ;;  %v3336_v48 = vld [vmem:[#allocation8 + $0x160] sm:$0xff] }
 0x23b   :  { %2677 = vrcp.f32 %v730_v49  ;;  %v3360_v49 = vld [vmem:[#allocation8 + $0x110] sm:$0xff] }
 0x246   :  { %v2676_v32 = vpop.eup %2675 }
 0x247   :  { %v733_v31 = vmul.f32 %v2676_v32, %v711_v36  ;;  %v3344_v32 = vld [vmem:[#allocation8 + $0x138] sm:$0xff]  ;;  %v3364_v36 = vld [vmem:[#allocation8 + $0x108] sm:$0xff] }
 0x248   :  { %v2678_v45 = vpop.eup %2677 }
 0x249   :  { %v736_v35 = vadd.f32 %v734_v26, %v733_v31  ;;  %v738_v42 = vsub.f32 1.0, %v2678_v45  ;;  %v740_v34 = vmul.f32 %v2678_v45, %v3156_v0  ;;  %v3321_v0 = vld [vmem:[#allocation8 + $0x170] sm:$0xff]  ;;  %v3370_v45 = vld [vmem:[#allocation8 + $0xf8] sm:$0xff] }
 0x24a   :  { %3812 = vst [vmem:[#allocation13_spill] sm:$0xff] %v3321_v0 }
 0x24b   :  { %2679 = vtanh.f32 %v736_v35  ;;  %v3366_v35 = vld [vmem:[#allocation8 + $0x118] sm:$0xff] }
 0x258   :  { %v2680_v43 = vpop.eup %2679 }
 0x259   :  { %v739_v41 = vmul.f32 %v2680_v43, %v738_v42  ;;  %v3374_v42 = vld [vmem:[#allocation8 + $0xf0] sm:$0xff]  ;;  %v3376_v43 = vld [vmem:[#allocation8 + $0x100] sm:$0xff] }
 0x25b   :  { %v3235_v38 = vadd.f32 %v740_v34, %v739_v41  ;;  %v3380_v41 = vld [vmem:[#allocation8 + $0xe0] sm:$0xff]  ;;  %v3384_v34 = vld [vmem:[#allocation8 + $0xd8] sm:$0xff] }
 0x25d   :  { %742 = vst [vmem:[#allocation9 + $0x1] sm:$0x1] %v3235_v38  ;;  %873 = vmatmul.mubr.f32.vlgmr.msra.gmra.mxu0 %v3235_v38  ;;  %2476 = vmatmul.mubr.f32.vlgmr.msra.gmra.mxu1 %v3235_v38 }
 0x25e   :  { %1044 = vmatpush1.msra.mxu0 %v2900_v51  ;;  %2479 = vmatpush3.msra.mxu1 %v2910_v55  ;;  %v3802_v51 = vld [vmem:[#allocation14_spill] sm:$0xff]  ;;  %v3806_v55 = vld [vmem:[#allocation20_spill] sm:$0xff] }
 0x25f   :  { %1045 = vmatprep.subr.mxu0 %v2902_v52  ;;  %2480 = vmatprep.subr.mxu1 %v3792_v27  ;;  %v3803_v52 = vld [vmem:[#allocation18_spill] sm:$0xff] }
 0x260   :  { %1046 = vmatpush1.msra.mxu0 %v2905_v53  ;;  %2481 = vmatpush3.msra.mxu1 %v2920_v58  ;;  %v3804_v53 = vld [vmem:[#allocation15_spill] sm:$0xff]  ;;  %v3809_v58 = vld [vmem:[#allocation21_spill] sm:$0xff] }
 0x261   :  { %1047 = vmatprep.subr.mxu0 %v2908_v54  ;;  %2482 = vmatprep.subr.mxu1 %v3792_v27  ;;  %v3805_v54 = vld [vmem:[#allocation16_spill] sm:$0xff] }
 0x262   :  { %1048 = vmatpush1.msra.mxu0 %v2913_v56  ;;  %2483 = vmatpush3.msra.mxu1 %v2930_v61  ;;  %v3807_v56 = vld [vmem:[#allocation17_spill] sm:$0xff] }
 0x263   :  { %1049 = vmatprep.subr.mxu0 %v2917_v57  ;;  %2484 = vmatprep.subr.mxu1 %v3792_v27  ;;  %v3808_v57 = vld [vmem:[#allocation19_spill] sm:$0xff] }
 0x264   :  { %1050 = vmatpush1.msra.mxu0 %v2923_v59  ;;  %2485 = vmatpush3.msra.mxu1 %v2940_v1  ;;  %v791_v59 = vld [vmem:[%s3737_s4] sm:$0x7] }
 0x265   :  { %1051 = vmatprep.subr.mxu0 %v2927_v60  ;;  %2486 = vmatprep.subr.mxu1 %v3792_v27  ;;  %v3810_v60 = vld [vmem:[#allocation22_spill] sm:$0xff] }
 0x266   :  { %1052 = vmatpush1.msra.mxu0 %v2933_v62  ;;  %2487 = vmatpush3.msra.mxu1 %v2950_v4  ;;  %v796_v61 = vrot.slane %v791_v59, %v3810_v60  ;;  %v950_v4 = vld [vmem:[#allocation2 + $0x2] ss:$8 sm:$0x7] }
 0x267   :  { %1053 = vmatprep.subr.mxu0 %v2937_v63  ;;  %2488 = vmatprep.subr.mxu1 %v3792_v27 }
 0x268   :  { %1054 = vmatpush1.msra.mxu0 %v2943_v2  ;;  %2489 = vmatpush3.msra.mxu1 %v2960_v7  ;;  %v3811_v2 = vld [vmem:[#allocation23_spill] sm:$0xff] }
 0x269   :  { %1055 = vmatprep.subr.mxu0 %v2947_v3  ;;  %2490 = vmatprep.subr.mxu1 %v3792_v27  ;;  %v800_v3 = vrot.slane %v791_v59, %v3811_v2 }
 0x26a   :  { %1056 = vmatpush1.msra.mxu0 %v2953_v5  ;;  %2491 = vmatpush3.msra.mxu1 %v2970_v10  ;;  %v959_v10 = vrot.slane %v950_v4, 1 }
 0x26b   :  { %1057 = vmatprep.subr.mxu0 %v2957_v6  ;;  %2492 = vmatprep.subr.mxu1 %v3792_v27 }
 0x26c   :  { %1058 = vmatpush1.msra.mxu0 %v2963_v8  ;;  %2493 = vmatpush3.msra.mxu1 %v2980_v13 }
 0x26d   :  { %1059 = vmatprep.subr.mxu0 %v2967_v9  ;;  %2494 = vmatprep.subr.mxu1 %v3792_v27 }
 0x26e   :  { %1060 = vmatpush1.msra.mxu0 %v2973_v11  ;;  %2495 = vmatpush3.msra.mxu1 %v2990_v16  ;;  %v804_v16 = vrot.slane %v791_v59, %v3142_v40  ;;  %v3412_v59 = vld [vmem:[#allocation8 + $0xa0] sm:$0xff] }
 0x26f   :  { %1061 = vmatprep.subr.mxu0 %v2977_v12  ;;  %2496 = vmatprep.subr.mxu1 %v3792_v27 }
 0x270   :  { %1062 = vmatpush1.msra.mxu0 %v2983_v14  ;;  %2497 = vmatpush3.msra.mxu1 %v3000_v19 }
 0x271   :  { %1063 = vmatprep.subr.mxu0 %v2987_v15  ;;  %2498 = vmatprep.subr.mxu1 %v3792_v27 }
 0x272   :  { %1064 = vmatpush1.msra.mxu0 %v2993_v17  ;;  %2499 = vmatpush3.msra.mxu1 %v3010_v22 }
 0x273   :  { %1065 = vmatprep.subr.mxu0 %v2997_v18  ;;  %2500 = vmatprep.subr.mxu1 %v3792_v27 }
 0x274   :  { %1066 = vmatpush1.msra.mxu0 %v3003_v20  ;;  %2501 = vmatpush3.msra.mxu1 %v3020_v25 }
 0x275   :  { %1067 = vmatprep.subr.mxu0 %v3007_v21  ;;  %2502 = vmatprep.subr.mxu1 %v3792_v27  ;;  %v969_v21 = vrot.slane %v950_v4, 2 }
 0x276   :  { %1068 = vmatpush1.msra.mxu0 %v3013_v23  ;;  %2503 = vmatpush3.msra.mxu1 %v3030_v28 }
 0x277   :  { %1069 = vmatprep.subr.mxu0 %v3017_v24  ;;  %2504 = vmatprep.subr.mxu1 %v3792_v27 }
 0x278   :  { %1070 = vmatpush1.msra.mxu0 %v3802_v51  ;;  %2505 = vmatpush3.msra.mxu1 %v3803_v52  ;;  %v3388_v51 = vld [vmem:[#allocation8 + $0xc8] sm:$0xff]  ;;  %v3392_v52 = vld [vmem:[#allocation8 + $0xc0] sm:$0xff] }
 0x279   :  { %1071 = vmatprep.subr.mxu0 %v3804_v53  ;;  %2506 = vmatprep.subr.mxu1 %v3792_v27  ;;  %v3394_v53 = vld [vmem:[#allocation8 + $0xd0] sm:$0xff] }
 0x27a   :  { %1072 = vmatpush1.msra.mxu0 %v3805_v54  ;;  %2507 = vmatpush3.msra.mxu1 %v3806_v55  ;;  %v3396_v54 = vld [vmem:[#allocation8 + $0xb0] sm:$0xff]  ;;  %v3400_v55 = vld [vmem:[#allocation8 + $0xa8] sm:$0xff] }
 0x27b   :  { %1073 = vmatprep.subr.mxu0 %v3807_v56  ;;  %2508 = vmatprep.subr.mxu1 %v3792_v27  ;;  %v3402_v56 = vld [vmem:[#allocation8 + $0xb8] sm:$0xff] }
 0x27c   :  { %1074 = vmatpush1.msra.mxu0 %v3808_v57  ;;  %1107 = vmatprep.mubr.f32.mxu0 %v3792_v27  ;;  %v3406_v57 = vld [vmem:[#allocation8 + $0x98] sm:$0xff] }
 0x27d   :  { %2509 = vmatpush3.msra.mxu1 %v3809_v58  ;;  %2510 = vmatprep.mubr.msk.f32.mxu1 %vm2833_vm0, %v3792_v27  ;;  %v3410_v58 = vld [vmem:[#allocation8 + $0x90] sm:$0xff] }
 0x27e   :  { %2513 = vmatprep.subr.mxu1 %v3792_v27  ;;  %1278 = vmatprep.subr.mxu0 %v3321_v0 }
 0x31d   :  { %v874_v62 = vpop.f32.mrf.mxu0  ;;  %v945_v63 = vpop.f32.mrf.mxu1 }
 0x31e   :  { %v875_v1 = vadd.f32 %v874_v62, %v796_v61  ;;  %v946_v18 = vadd.f32 %v945_v63, %v804_v16  ;;  %v3416_v61 = vld [vmem:[#allocation8 + $0x80] sm:$0xff]  ;;  %v3420_v62 = vld [vmem:[#allocation8 + $0x78] sm:$0xff]  ;;  %v3422_v63 = vld [vmem:[#allocation8 + $0x88] sm:$0xff] }
 0x31f   :  { %v876_v5 = vpop.f32.mrf.mxu0  ;;  %v2477_v6 = vpop.f32.mrf.mxu1  ;;  %v3472_v16 = vld [vmem:[#allocation8 + $0x10] sm:$0xff] }
 0x320   :  { %v951_v7 = vadd.f32 %v950_v4, %v875_v1  ;;  %v877_v9 = vadd.f32 %v876_v5, %v800_v3  ;;  %v3426_v1 = vld [vmem:[#allocation8 + $0x68] sm:$0xff]  ;;  %v3430_v3 = vld [vmem:[#allocation8 + $0x60] sm:$0xff]  ;;  %v3432_v4 = vld [vmem:[#allocation8 + $0x70] sm:$0xff]  ;;  %3820 = vst [vmem:[#allocation21_spill] sm:$0xff] %v3472_v16 }
 0x321   :  { %v3436_v5 = vld [vmem:[#allocation8 + $0x50] sm:$0xff]  ;;  %v3440_v6 = vld [vmem:[#allocation8 + $0x48] sm:$0xff] }
 0x322   :  { %v2173_v8 = vmul.f32 -1.442695, %v951_v7  ;;  %v961_v11 = vadd.f32 %v959_v10, %v877_v9  ;;  %v3442_v7 = vld [vmem:[#allocation8 + $0x58] sm:$0xff]  ;;  %v3450_v9 = vld [vmem:[#allocation8 + $0x30] sm:$0xff]  ;;  %v3452_v10 = vld [vmem:[#allocation8 + $0x40] sm:$0xff] }
 0x323   :  { %3813 = vst [vmem:[#allocation14_spill] sm:$0xff] %v3450_v9  ;;  %3814 = vst [vmem:[#allocation18_spill] sm:$0xff] %v3452_v10 }
 0x324   :  { %2681 = vpow2.f32 %v2173_v8  ;;  %v2174_v12 = vmul.f32 -1.442695, %v961_v11  ;;  %v3446_v8 = vld [vmem:[#allocation8 + $0x38] sm:$0xff]  ;;  %v3456_v11 = vld [vmem:[#allocation8 + $0x20] sm:$0xff] }
 0x325   :  { %3815 = vst [vmem:[#allocation15_spill] sm:$0xff] %v3456_v11 }
 0x326   :  { %2683 = vpow2.f32 %v2174_v12  ;;  %v3460_v12 = vld [vmem:[#allocation8 + $0x18] sm:$0xff] }
 0x327   :  { %3816 = vst [vmem:[#allocation16_spill] sm:$0xff] %v3460_v12 }
 0x331   :  { %v2682_v13 = vpop.eup %2681 }
 0x332   :  { %v955_v14 = vadd.f32 1.0, %v2682_v13  ;;  %v3462_v13 = vld [vmem:[#allocation8 + $0x28] sm:$0xff] }
 0x333   :  { %v2684_v15 = vpop.eup %2683  ;;  %3817 = vst [vmem:[#allocation20_spill] sm:$0xff] %v3462_v13 }
 0x334   :  { %2685 = vrcp.f32 %v955_v14  ;;  %v965_v17 = vadd.f32 1.0, %v2684_v15  ;;  %v3466_v14 = vld [vmem:[#allocation8 + $0x8] sm:$0xff]  ;;  %v3470_v15 = vld [vmem:[#allocation8] sm:$0xff] }
 0x335   :  { %3818 = vst [vmem:[#allocation17_spill] sm:$0xff] %v3466_v14  ;;  %3819 = vst [vmem:[#allocation19_spill] sm:$0xff] %v3470_v15 }
 0x336   :  { %2687 = vrcp.f32 %v965_v17  ;;  %v1026_v17 = vld [vmem:[%s3737_s4] sm:$0x7] }
 0x341   :  { %v2686_v19 = vpop.eup %2685 }
 0x342   :  { %v968_v20 = vmul.f32 %v2686_v19, %v946_v18  ;;  %v1031_v18 = vrot.slane %v1026_v17, %v3810_v60 }
 0x343   :  { %v2688_v23 = vpop.eup %2687 }
 0x344   :  { %v971_v22 = vadd.f32 %v969_v21, %v968_v20  ;;  %v973_v24 = vsub.f32 1.0, %v2688_v23  ;;  %v975_v28 = vmul.f32 %v2688_v23, %v3235_v38  ;;  %v3386_v38 = vld [vmem:[#allocation8 + $0xe8] sm:$0xff] }
 0x345   :  { %v1185_v23 = vld [vmem:[#allocation2 + $0x3] ss:$8 sm:$0x7] }
 0x346   :  { %2689 = vtanh.f32 %v971_v22  ;;  %v1035_v22 = vrot.slane %v1026_v17, %v3811_v2 }
 0x353   :  { %v2690_v25 = vpop.eup %2689 }
 0x354   :  { %v974_v26 = vmul.f32 %v2690_v25, %v973_v24 }
 0x356   :  { %v3313_v31 = vadd.f32 %v975_v28, %v974_v26 }
 0x358   :  { %977 = vst [vmem:[#allocation9 + $0x2] sm:$0x1] %v3313_v31  ;;  %1108 = vmatmul.mubr.f32.vlgmr.msra.gmra.mxu0 %v3313_v31  ;;  %2511 = vmatmul.mubr.f32.vlgmr.msra.gmra.mxu1 %v3313_v31 }
 0x359   :  { %1342 = vmatprep.mubr.f32.mxu0 %v3792_v27  ;;  %2545 = vmatprep.mubr.msk.f32.mxu1 %vm2833_vm0, %v3792_v27 }
 0x35a   :  { %1279 = vmatpush1.msra.mxu0 %v3324_v29  ;;  %2514 = vmatpush3.msra.mxu1 %v3326_v30 }
 0x35b   :  { %1280 = vmatprep.subr.mxu0 %v3330_v33  ;;  %2515 = vmatprep.subr.mxu1 %v3792_v27 }
 0x35c   :  { %1281 = vmatpush1.msra.mxu0 %v3334_v47  ;;  %2516 = vmatpush3.msra.mxu1 %v3336_v48 }
 0x35d   :  { %1282 = vmatprep.subr.mxu0 %v3340_v50  ;;  %2517 = vmatprep.subr.mxu1 %v3792_v27 }
 0x35e   :  { %1283 = vmatpush1.msra.mxu0 %v3344_v32  ;;  %2518 = vmatpush3.msra.mxu1 %v3346_v39 }
 0x35f   :  { %1284 = vmatprep.subr.mxu0 %v3350_v46  ;;  %2519 = vmatprep.subr.mxu1 %v3792_v27 }
 0x360   :  { %1285 = vmatpush1.msra.mxu0 %v3354_v44  ;;  %2520 = vmatpush3.msra.mxu1 %v3356_v37 }
 0x361   :  { %1286 = vmatprep.subr.mxu0 %v3360_v49  ;;  %2521 = vmatprep.subr.mxu1 %v3792_v27 }
 0x362   :  { %1287 = vmatpush1.msra.mxu0 %v3364_v36  ;;  %2522 = vmatpush3.msra.mxu1 %v3366_v35 }
 0x363   :  { %1288 = vmatprep.subr.mxu0 %v3370_v45  ;;  %2523 = vmatprep.subr.mxu1 %v3792_v27 }
 0x364   :  { %1289 = vmatpush1.msra.mxu0 %v3374_v42  ;;  %2524 = vmatpush3.msra.mxu1 %v3376_v43 }
 0x365   :  { %1290 = vmatprep.subr.mxu0 %v3380_v41  ;;  %2525 = vmatprep.subr.mxu1 %v3792_v27 }
 0x366   :  { %1291 = vmatpush1.msra.mxu0 %v3384_v34  ;;  %2526 = vmatpush3.msra.mxu1 %v3386_v38 }
 0x367   :  { %1292 = vmatprep.subr.mxu0 %v3388_v51  ;;  %2527 = vmatprep.subr.mxu1 %v3792_v27 }
 0x368   :  { %1293 = vmatpush1.msra.mxu0 %v3392_v52  ;;  %2528 = vmatpush3.msra.mxu1 %v3394_v53 }
 0x369   :  { %1294 = vmatprep.subr.mxu0 %v3396_v54  ;;  %2529 = vmatprep.subr.mxu1 %v3792_v27 }
 0x36a   :  { %1295 = vmatpush1.msra.mxu0 %v3400_v55  ;;  %2530 = vmatpush3.msra.mxu1 %v3402_v56 }
 0x36b   :  { %1296 = vmatprep.subr.mxu0 %v3406_v57  ;;  %2531 = vmatprep.subr.mxu1 %v3792_v27 }
 0x36c   :  { %1297 = vmatpush1.msra.mxu0 %v3410_v58  ;;  %2532 = vmatpush3.msra.mxu1 %v3412_v59 }
 0x36d   :  { %1298 = vmatprep.subr.mxu0 %v3416_v61  ;;  %2533 = vmatprep.subr.mxu1 %v3792_v27 }
 0x36e   :  { %1299 = vmatpush1.msra.mxu0 %v3420_v62  ;;  %2534 = vmatpush3.msra.mxu1 %v3422_v63 }
 0x36f   :  { %1300 = vmatprep.subr.mxu0 %v3426_v1  ;;  %2535 = vmatprep.subr.mxu1 %v3792_v27 }
 0x370   :  { %1301 = vmatpush1.msra.mxu0 %v3430_v3  ;;  %2536 = vmatpush3.msra.mxu1 %v3432_v4 }
 0x371   :  { %1302 = vmatprep.subr.mxu0 %v3436_v5  ;;  %2537 = vmatprep.subr.mxu1 %v3792_v27 }
 0x372   :  { %1303 = vmatpush1.msra.mxu0 %v3440_v6  ;;  %2538 = vmatpush3.msra.mxu1 %v3442_v7 }
 0x373   :  { %1304 = vmatprep.subr.mxu0 %v3446_v8  ;;  %2539 = vmatprep.subr.mxu1 %v3792_v27 }
 0x374   :  { %1305 = vmatpush1.msra.mxu0 %v3450_v9  ;;  %2540 = vmatpush3.msra.mxu1 %v3452_v10  ;;  %v1204_v9 = vrot.slane %v1185_v23, 2 }
 0x375   :  { %1306 = vmatprep.subr.mxu0 %v3456_v11  ;;  %2541 = vmatprep.subr.mxu1 %v3792_v27  ;;  %v1039_v11 = vrot.slane %v1026_v17, %v3142_v40  ;;  %v1261_v17 = vld [vmem:[%s3737_s4] sm:$0x7] }
 0x376   :  { %1307 = vmatpush1.msra.mxu0 %v3460_v12  ;;  %2542 = vmatpush3.msra.mxu1 %v3462_v13 }
 0x377   :  { %1308 = vmatprep.subr.mxu0 %v3466_v14  ;;  %2543 = vmatprep.subr.mxu1 %v3792_v27 }
 0x378   :  { %1309 = vmatpush1.msra.mxu0 %v3470_v15  ;;  %2544 = vmatpush3.msra.mxu1 %v3472_v16 }
 0x379   :  { %1513 = vmatprep.subr.mxu0 %v3321_v0  ;;  %2548 = vmatprep.subr.mxu1 %v3792_v27  ;;  %v1194_v0 = vrot.slane %v1185_v23, 1 }
 0x418   :  { %v1109_v19 = vpop.f32.mrf.mxu0  ;;  %v1180_v20 = vpop.f32.mrf.mxu1 }
 0x419   :  { %v1110_v21 = vadd.f32 %v1109_v19, %v1031_v18  ;;  %v1181_v19 = vadd.f32 %v1180_v20, %v1039_v11  ;;  %v3826_v11 = vld [vmem:[#allocation17_spill] sm:$0xff]  ;;  %v3830_v20 = vld [vmem:[#allocation22_spill] sm:$0xff] }
 0x41a   :  { %v1111_v24 = vpop.f32.mrf.mxu0  ;;  %v2512_v25 = vpop.f32.mrf.mxu1 }
 0x41b   :  { %v1186_v26 = vadd.f32 %v1185_v23, %v1110_v21  ;;  %v1112_v16 = vadd.f32 %v1111_v24, %v1035_v22  ;;  %v1266_v23 = vrot.slane %v1261_v17, %v3830_v20 }
 0x41d   :  { %v2175_v28 = vmul.f32 -1.442695, %v1186_v26  ;;  %v1196_v15 = vadd.f32 %v1194_v0, %v1112_v16  ;;  %v3829_v16 = vld [vmem:[#allocation13_spill] sm:$0xff] }
 0x41f   :  { %2691 = vpow2.f32 %v2175_v28  ;;  %v2176_v14 = vmul.f32 -1.442695, %v1196_v15 }
 0x421   :  { %2693 = vpow2.f32 %v2176_v14 }
 0x42c   :  { %v2692_v13 = vpop.eup %2691 }
 0x42d   :  { %v1190_v12 = vadd.f32 1.0, %v2692_v13  ;;  %v3828_v13 = vld [vmem:[#allocation21_spill] sm:$0xff] }
 0x42e   :  { %v2694_v60 = vpop.eup %2693 }
 0x42f   :  { %2695 = vrcp.f32 %v1190_v12  ;;  %v1200_v18 = vadd.f32 1.0, %v2694_v60  ;;  %v3821_v60 = vld [vmem:[#allocation14_spill] sm:$0xff]  ;;  %v3827_v12 = vld [vmem:[#allocation19_spill] sm:$0xff] }
 0x431   :  { %2697 = vrcp.f32 %v1200_v18 }
 0x43c   :  { %v2696_v2 = vpop.eup %2695 }
 0x43d   :  { %v1203_v10 = vmul.f32 %v2696_v2, %v1181_v19  ;;  %v3822_v2 = vld [vmem:[#allocation18_spill] sm:$0xff]  ;;  %v3831_v19 = vld [vmem:[#allocation23_spill] sm:$0xff] }
 0x43e   :  { %v2698_v22 = vpop.eup %2697 }
 0x43f   :  { %v1206_v21 = vadd.f32 %v1204_v9, %v1203_v10  ;;  %v1208_v24 = vsub.f32 1.0, %v2698_v22  ;;  %v1210_v14 = vmul.f32 %v2698_v22, %v3313_v31  ;;  %v3823_v31 = vld [vmem:[#allocation15_spill] sm:$0xff]  ;;  %v3824_v9 = vld [vmem:[#allocation16_spill] sm:$0xff] }
 0x440   :  { %v3825_v10 = vld [vmem:[#allocation20_spill] sm:$0xff] }
 0x441   :  { %2699 = vtanh.f32 %v1206_v21  ;;  %v1270_v21 = vrot.slane %v1261_v17, %v3831_v19  ;;  %v1420_v22 = vld [vmem:[#allocation2 + $0x4] ss:$8 sm:$0x7] }
 0x44e   :  { %v2700_v25 = vpop.eup %2699 }
 0x44f   :  { %v1209_v0 = vmul.f32 %v2700_v25, %v1208_v24 }
 0x451   :  { %v3489_v15 = vadd.f32 %v1210_v14, %v1209_v0 }
 0x453   :  { %1212 = vst [vmem:[#allocation9 + $0x3] sm:$0x1] %v3489_v15  ;;  %1343 = vmatmul.mubr.f32.vlgmr.msra.gmra.mxu0 %v3489_v15  ;;  %2546 = vmatmul.mubr.f32.vlgmr.msra.gmra.mxu1 %v3489_v15 }
 0x454   :  { %1514 = vmatpush1.msra.mxu0 %v3324_v29  ;;  %2549 = vmatpush3.msra.mxu1 %v3326_v30 }
 0x455   :  { %1515 = vmatprep.subr.mxu0 %v3330_v33  ;;  %2550 = vmatprep.subr.mxu1 %v3792_v27 }
 0x456   :  { %1516 = vmatpush1.msra.mxu0 %v3334_v47  ;;  %2551 = vmatpush3.msra.mxu1 %v3336_v48 }
 0x457   :  { %1517 = vmatprep.subr.mxu0 %v3340_v50  ;;  %2552 = vmatprep.subr.mxu1 %v3792_v27 }
 0x458   :  { %1518 = vmatpush1.msra.mxu0 %v3344_v32  ;;  %2553 = vmatpush3.msra.mxu1 %v3346_v39 }
 0x459   :  { %1519 = vmatprep.subr.mxu0 %v3350_v46  ;;  %2554 = vmatprep.subr.mxu1 %v3792_v27 }
 0x45a   :  { %1520 = vmatpush1.msra.mxu0 %v3354_v44  ;;  %2555 = vmatpush3.msra.mxu1 %v3356_v37 }
 0x45b   :  { %1521 = vmatprep.subr.mxu0 %v3360_v49  ;;  %2556 = vmatprep.subr.mxu1 %v3792_v27 }
 0x45c   :  { %1522 = vmatpush1.msra.mxu0 %v3364_v36  ;;  %2557 = vmatpush3.msra.mxu1 %v3366_v35 }
 0x45d   :  { %1523 = vmatprep.subr.mxu0 %v3370_v45  ;;  %2558 = vmatprep.subr.mxu1 %v3792_v27 }
 0x45e   :  { %1524 = vmatpush1.msra.mxu0 %v3374_v42  ;;  %2559 = vmatpush3.msra.mxu1 %v3376_v43 }
 0x45f   :  { %1525 = vmatprep.subr.mxu0 %v3380_v41  ;;  %2560 = vmatprep.subr.mxu1 %v3792_v27 }
 0x460   :  { %1526 = vmatpush1.msra.mxu0 %v3384_v34  ;;  %2561 = vmatpush3.msra.mxu1 %v3386_v38 }
 0x461   :  { %1527 = vmatprep.subr.mxu0 %v3388_v51  ;;  %2562 = vmatprep.subr.mxu1 %v3792_v27 }
 0x462   :  { %1528 = vmatpush1.msra.mxu0 %v3392_v52  ;;  %2563 = vmatpush3.msra.mxu1 %v3394_v53 }
 0x463   :  { %1529 = vmatprep.subr.mxu0 %v3396_v54  ;;  %2564 = vmatprep.subr.mxu1 %v3792_v27 }
 0x464   :  { %1530 = vmatpush1.msra.mxu0 %v3400_v55  ;;  %2565 = vmatpush3.msra.mxu1 %v3402_v56 }
 0x465   :  { %1531 = vmatprep.subr.mxu0 %v3406_v57  ;;  %2566 = vmatprep.subr.mxu1 %v3792_v27 }
 0x466   :  { %1532 = vmatpush1.msra.mxu0 %v3410_v58  ;;  %2567 = vmatpush3.msra.mxu1 %v3412_v59 }
 0x467   :  { %1533 = vmatprep.subr.mxu0 %v3416_v61  ;;  %2568 = vmatprep.subr.mxu1 %v3792_v27 }
 0x468   :  { %1534 = vmatpush1.msra.mxu0 %v3420_v62  ;;  %2569 = vmatpush3.msra.mxu1 %v3422_v63 }
 0x469   :  { %1535 = vmatprep.subr.mxu0 %v3426_v1  ;;  %2570 = vmatprep.subr.mxu1 %v3792_v27 }
 0x46a   :  { %1536 = vmatpush1.msra.mxu0 %v3430_v3  ;;  %2571 = vmatpush3.msra.mxu1 %v3432_v4 }
 0x46b   :  { %1537 = vmatprep.subr.mxu0 %v3436_v5  ;;  %2572 = vmatprep.subr.mxu1 %v3792_v27 }
 0x46c   :  { %1538 = vmatpush1.msra.mxu0 %v3440_v6  ;;  %2573 = vmatpush3.msra.mxu1 %v3442_v7 }
 0x46d   :  { %1539 = vmatprep.subr.mxu0 %v3446_v8  ;;  %2574 = vmatprep.subr.mxu1 %v3792_v27 }
 0x46e   :  { %1540 = vmatpush1.msra.mxu0 %v3821_v60  ;;  %2575 = vmatpush3.msra.mxu1 %v3822_v2  ;;  %v1439_v60 = vrot.slane %v1420_v22, 2 }
 0x46f   :  { %1541 = vmatprep.subr.mxu0 %v3823_v31  ;;  %2576 = vmatprep.subr.mxu1 %v3792_v27  ;;  %v1274_v31 = vrot.slane %v1261_v17, %v3142_v40  ;;  %v3839_v17 = vld [vmem:[#allocation21_spill] sm:$0xff] }
 0x470   :  { %1542 = vmatpush1.msra.mxu0 %v3824_v9  ;;  %2577 = vmatpush3.msra.mxu1 %v3825_v10 }
 0x471   :  { %1543 = vmatprep.subr.mxu0 %v3826_v11  ;;  %2578 = vmatprep.subr.mxu1 %v3792_v27 }
 0x472   :  { %1544 = vmatpush1.msra.mxu0 %v3827_v12  ;;  %1577 = vmatprep.mubr.f32.mxu0 %v3792_v27 }
 0x473   :  { %2579 = vmatpush3.msra.mxu1 %v3828_v13  ;;  %2580 = vmatprep.mubr.msk.f32.mxu1 %vm2833_vm0, %v3792_v27 }
 0x474   :  { %1748 = vmatprep.subr.mxu0 %v3829_v16  ;;  %2583 = vmatprep.subr.mxu1 %v3792_v27  ;;  %v1429_v16 = vrot.slane %v1420_v22, 1 }
 0x513   :  { %v1344_v26 = vpop.f32.mrf.mxu0  ;;  %v1415_v28 = vpop.f32.mrf.mxu1 }
 0x514   :  { %v1345_v18 = vadd.f32 %v1344_v26, %v1266_v23  ;;  %v1416_v26 = vadd.f32 %v1415_v28, %v1274_v31  ;;  %v3835_v31 = vld [vmem:[#allocation16_spill] sm:$0xff] }
 0x515   :  { %v1346_v24 = vpop.f32.mrf.mxu0  ;;  %v2547_v25 = vpop.f32.mrf.mxu1  ;;  %v1496_v28 = vld [vmem:[%s3737_s4] sm:$0x7] }
 0x516   :  { %v1421_v0 = vadd.f32 %v1420_v22, %v1345_v18  ;;  %v1347_v13 = vadd.f32 %v1346_v24, %v1270_v21 }
 0x518   :  { %v2177_v14 = vmul.f32 -1.442695, %v1421_v0  ;;  %v1431_v12 = vadd.f32 %v1429_v16, %v1347_v13  ;;  %v3838_v16 = vld [vmem:[#allocation19_spill] sm:$0xff] }
 0x51a   :  { %2701 = vpow2.f32 %v2177_v14  ;;  %v2178_v11 = vmul.f32 -1.442695, %v1431_v12 }
 0x51c   :  { %2703 = vpow2.f32 %v2178_v11 }
 0x527   :  { %v2702_v10 = vpop.eup %2701 }
 0x528   :  { %v1425_v9 = vadd.f32 1.0, %v2702_v10  ;;  %v3837_v10 = vld [vmem:[#allocation17_spill] sm:$0xff] }
 0x529   :  { %v2704_v20 = vpop.eup %2703 }
 0x52a   :  { %2705 = vrcp.f32 %v1425_v9  ;;  %v1435_v23 = vadd.f32 1.0, %v2704_v20  ;;  %v3836_v9 = vld [vmem:[#allocation20_spill] sm:$0xff]  ;;  %v3840_v20 = vld [vmem:[#allocation13_spill] sm:$0xff] }
 0x52c   :  { %2707 = vrcp.f32 %v1435_v23 }
 0x537   :  { %v2706_v19 = vpop.eup %2705 }
 0x538   :  { %v1438_v2 = vmul.f32 %v2706_v19, %v1416_v26  ;;  %v3841_v19 = vld [vmem:[#allocation22_spill] sm:$0xff]  ;;  %v3842_v26 = vld [vmem:[#allocation23_spill] sm:$0xff] }
 0x539   :  { %v2708_v21 = vpop.eup %2707  ;;  %v1501_v22 = vrot.slane %v1496_v28, %v3841_v19 }
 0x53a   :  { %v1441_v18 = vadd.f32 %v1439_v60, %v1438_v2  ;;  %v1443_v24 = vsub.f32 1.0, %v2708_v21  ;;  %v1445_v11 = vmul.f32 %v2708_v21, %v3489_v15  ;;  %v3832_v15 = vld [vmem:[#allocation14_spill] sm:$0xff]  ;;  %v3834_v2 = vld [vmem:[#allocation15_spill] sm:$0xff] }
 0x53b   :  { %v3833_v60 = vld [vmem:[#allocation18_spill] sm:$0xff] }
 0x53c   :  { %2709 = vtanh.f32 %v1441_v18  ;;  %v1505_v18 = vrot.slane %v1496_v28, %v3842_v26  ;;  %v1655_v21 = vld [vmem:[#allocation2 + $0x5] ss:$8 sm:$0x7] }
 0x549   :  { %v2710_v25 = vpop.eup %2709 }
 0x54a   :  { %v1444_v13 = vmul.f32 %v2710_v25, %v1443_v24 }
 0x54c   :  { %v3568_v12 = vadd.f32 %v1445_v11, %v1444_v13 }
 0x54e   :  { %1447 = vst [vmem:[#allocation9 + $0x4] sm:$0x1] %v3568_v12  ;;  %1578 = vmatmul.mubr.f32.vlgmr.msra.gmra.mxu0 %v3568_v12  ;;  %2581 = vmatmul.mubr.f32.vlgmr.msra.gmra.mxu1 %v3568_v12 }
 0x54f   :  { %1749 = vmatpush1.msra.mxu0 %v3324_v29  ;;  %2584 = vmatpush3.msra.mxu1 %v3326_v30 }
 0x550   :  { %1750 = vmatprep.subr.mxu0 %v3330_v33  ;;  %2585 = vmatprep.subr.mxu1 %v3792_v27 }
 0x551   :  { %1751 = vmatpush1.msra.mxu0 %v3334_v47  ;;  %2586 = vmatpush3.msra.mxu1 %v3336_v48 }
 0x552   :  { %1752 = vmatprep.subr.mxu0 %v3340_v50  ;;  %2587 = vmatprep.subr.mxu1 %v3792_v27 }
 0x553   :  { %1753 = vmatpush1.msra.mxu0 %v3344_v32  ;;  %2588 = vmatpush3.msra.mxu1 %v3346_v39 }
 0x554   :  { %1754 = vmatprep.subr.mxu0 %v3350_v46  ;;  %2589 = vmatprep.subr.mxu1 %v3792_v27 }
 0x555   :  { %1755 = vmatpush1.msra.mxu0 %v3354_v44  ;;  %2590 = vmatpush3.msra.mxu1 %v3356_v37 }
 0x556   :  { %1756 = vmatprep.subr.mxu0 %v3360_v49  ;;  %2591 = vmatprep.subr.mxu1 %v3792_v27 }
 0x557   :  { %1757 = vmatpush1.msra.mxu0 %v3364_v36  ;;  %2592 = vmatpush3.msra.mxu1 %v3366_v35 }
 0x558   :  { %1758 = vmatprep.subr.mxu0 %v3370_v45  ;;  %2593 = vmatprep.subr.mxu1 %v3792_v27 }
 0x559   :  { %1759 = vmatpush1.msra.mxu0 %v3374_v42  ;;  %2594 = vmatpush3.msra.mxu1 %v3376_v43 }
 0x55a   :  { %1760 = vmatprep.subr.mxu0 %v3380_v41  ;;  %2595 = vmatprep.subr.mxu1 %v3792_v27 }
 0x55b   :  { %1761 = vmatpush1.msra.mxu0 %v3384_v34  ;;  %2596 = vmatpush3.msra.mxu1 %v3386_v38 }
 0x55c   :  { %1762 = vmatprep.subr.mxu0 %v3388_v51  ;;  %2597 = vmatprep.subr.mxu1 %v3792_v27 }
 0x55d   :  { %1763 = vmatpush1.msra.mxu0 %v3392_v52  ;;  %2598 = vmatpush3.msra.mxu1 %v3394_v53 }
 0x55e   :  { %1764 = vmatprep.subr.mxu0 %v3396_v54  ;;  %2599 = vmatprep.subr.mxu1 %v3792_v27 }
 0x55f   :  { %1765 = vmatpush1.msra.mxu0 %v3400_v55  ;;  %2600 = vmatpush3.msra.mxu1 %v3402_v56 }
 0x560   :  { %1766 = vmatprep.subr.mxu0 %v3406_v57  ;;  %2601 = vmatprep.subr.mxu1 %v3792_v27 }
 0x561   :  { %1767 = vmatpush1.msra.mxu0 %v3410_v58  ;;  %2602 = vmatpush3.msra.mxu1 %v3412_v59 }
 0x562   :  { %1768 = vmatprep.subr.mxu0 %v3416_v61  ;;  %2603 = vmatprep.subr.mxu1 %v3792_v27 }
 0x563   :  { %1769 = vmatpush1.msra.mxu0 %v3420_v62  ;;  %2604 = vmatpush3.msra.mxu1 %v3422_v63 }
 0x564   :  { %1770 = vmatprep.subr.mxu0 %v3426_v1  ;;  %2605 = vmatprep.subr.mxu1 %v3792_v27 }
 0x565   :  { %1771 = vmatpush1.msra.mxu0 %v3430_v3  ;;  %2606 = vmatpush3.msra.mxu1 %v3432_v4 }
 0x566   :  { %1772 = vmatprep.subr.mxu0 %v3436_v5  ;;  %2607 = vmatprep.subr.mxu1 %v3792_v27 }
 0x567   :  { %1773 = vmatpush1.msra.mxu0 %v3440_v6  ;;  %2608 = vmatpush3.msra.mxu1 %v3442_v7 }
 0x568   :  { %1774 = vmatprep.subr.mxu0 %v3446_v8  ;;  %2609 = vmatprep.subr.mxu1 %v3792_v27 }
 0x569   :  { %1775 = vmatpush1.msra.mxu0 %v3832_v15  ;;  %2610 = vmatpush3.msra.mxu1 %v3833_v60  ;;  %v1674_v15 = vrot.slane %v1655_v21, 2 }
 0x56a   :  { %1776 = vmatprep.subr.mxu0 %v3834_v2  ;;  %2611 = vmatprep.subr.mxu1 %v3792_v27  ;;  %v1509_v2 = vrot.slane %v1496_v28, %v3142_v40 }
 0x56b   :  { %1777 = vmatpush1.msra.mxu0 %v3835_v31  ;;  %2612 = vmatpush3.msra.mxu1 %v3836_v9 }
 0x56c   :  { %1778 = vmatprep.subr.mxu0 %v3837_v10  ;;  %2613 = vmatprep.subr.mxu1 %v3792_v27 }
 0x56d   :  { %1779 = vmatpush1.msra.mxu0 %v3838_v16  ;;  %1812 = vmatprep.mubr.f32.mxu0 %v3792_v27 }
 0x56e   :  { %2614 = vmatpush3.msra.mxu1 %v3839_v17  ;;  %2615 = vmatprep.mubr.msk.f32.mxu1 %vm2833_vm0, %v3792_v27 }
 0x56f   :  { %1983 = vmatprep.subr.mxu0 %v3840_v20  ;;  %2618 = vmatprep.subr.mxu1 %v3792_v27  ;;  %v1664_v20 = vrot.slane %v1655_v21, 1 }
 0x60e   :  { %v1579_v0 = vpop.f32.mrf.mxu0  ;;  %v1650_v14 = vpop.f32.mrf.mxu1 }
 0x60f   :  { %v1580_v23 = vadd.f32 %v1579_v0, %v1501_v22  ;;  %v1651_v0 = vadd.f32 %v1650_v14, %v1509_v2 }
 0x610   :  { %v1581_v24 = vpop.f32.mrf.mxu0  ;;  %v2582_v25 = vpop.f32.mrf.mxu1 }
 0x611   :  { %v1656_v13 = vadd.f32 %v1655_v21, %v1580_v23  ;;  %v1582_v17 = vadd.f32 %v1581_v24, %v1505_v18 }
 0x613   :  { %v2179_v11 = vmul.f32 -1.442695, %v1656_v13  ;;  %v1666_v16 = vadd.f32 %v1664_v20, %v1582_v17 }
 0x615   :  { %2711 = vpow2.f32 %v2179_v11  ;;  %v2180_v10 = vmul.f32 -1.442695, %v1666_v16 }
 0x617   :  { %2713 = vpow2.f32 %v2180_v10 }
 0x622   :  { %v2712_v9 = vpop.eup %2711 }
 0x623   :  { %v1660_v31 = vadd.f32 1.0, %v2712_v9 }
 0x624   :  { %v2714_v19 = vpop.eup %2713 }
 0x625   :  { %2715 = vrcp.f32 %v1660_v31  ;;  %v1670_v22 = vadd.f32 1.0, %v2714_v19  ;;  %v2125_v19 = vld [vmem:[#allocation2 + $0x7] ss:$8 sm:$0x7] }
 0x626   :  { %v2134_v20 = vrot.slane %v2125_v19, 1 }
 0x627   :  { %2717 = vrcp.f32 %v1670_v22 }
 0x632   :  { %v2716_v26 = vpop.eup %2715 }
 0x633   :  { %v1673_v60 = vmul.f32 %v2716_v26, %v1651_v0 }
 0x634   :  { %v2718_v18 = vpop.eup %2717 }
 0x635   :  { %v1676_v23 = vadd.f32 %v1674_v15, %v1673_v60  ;;  %v1678_v24 = vsub.f32 1.0, %v2718_v18  ;;  %v1680_v10 = vmul.f32 %v2718_v18, %v3568_v12  ;;  %v1966_v15 = vld [vmem:[%s3737_s4] sm:$0x7] }
 0x637   :  { %2719 = vtanh.f32 %v1676_v23 }
 0x644   :  { %v2720_v25 = vpop.eup %2719 }
 0x645   :  { %v1679_v17 = vmul.f32 %v2720_v25, %v1678_v24  ;;  %v1979_v25 = vrot.slane %v1966_v15, %v3142_v40 }
 0x647   :  { %v3647_v16 = vadd.f32 %v1680_v10, %v1679_v17 }
 0x649   :  { %1682 = vst [vmem:[#allocation9 + $0x5] sm:$0x1] %v3647_v16  ;;  %1813 = vmatmul.mubr.f32.vlgmr.msra.gmra.mxu0 %v3647_v16  ;;  %2616 = vmatmul.mubr.f32.vlgmr.msra.gmra.mxu1 %v3647_v16 }
 0x64a   :  { %1984 = vmatpush1.msra.mxu0 %v3324_v29  ;;  %2619 = vmatpush3.msra.mxu1 %v3326_v30  ;;  %v3843_v29 = vld [vmem:[#allocation14_spill] sm:$0xff] }
 0x64b   :  { %1985 = vmatprep.subr.mxu0 %v3330_v33  ;;  %2620 = vmatprep.subr.mxu1 %v3792_v27  ;;  %v3844_v30 = vld [vmem:[#allocation18_spill] sm:$0xff]  ;;  %v3845_v33 = vld [vmem:[#allocation15_spill] sm:$0xff] }
 0x64c   :  { %1986 = vmatpush1.msra.mxu0 %v3334_v47  ;;  %2621 = vmatpush3.msra.mxu1 %v3336_v48  ;;  %v3846_v47 = vld [vmem:[#allocation16_spill] sm:$0xff] }
 0x64d   :  { %1987 = vmatprep.subr.mxu0 %v3340_v50  ;;  %2622 = vmatprep.subr.mxu1 %v3792_v27  ;;  %v3847_v48 = vld [vmem:[#allocation20_spill] sm:$0xff]  ;;  %v3848_v50 = vld [vmem:[#allocation17_spill] sm:$0xff] }
 0x64e   :  { %1988 = vmatpush1.msra.mxu0 %v3344_v32  ;;  %2623 = vmatpush3.msra.mxu1 %v3346_v39  ;;  %v3849_v32 = vld [vmem:[#allocation19_spill] sm:$0xff]  ;;  %v3850_v39 = vld [vmem:[#allocation21_spill] sm:$0xff] }
 0x64f   :  { %1989 = vmatprep.subr.mxu0 %v3350_v46  ;;  %2624 = vmatprep.subr.mxu1 %v3792_v27  ;;  %v1731_v46 = vld [vmem:[%s3737_s4] sm:$0x7]  ;;  %s2834_s4 = smov [#allocation9]  }
 0x650   :  { %1990 = vmatpush1.msra.mxu0 %v3354_v44  ;;  %2625 = vmatpush3.msra.mxu1 %v3356_v37  ;;  %v3851_v44 = vld [vmem:[#allocation22_spill] sm:$0xff]  ;;  %s2159_s29 = sshll.u32 %s2834_s4, 4  ;;  %s2160_s29 = int_to_ptr.vmem [resolvable:$true] %s2159_s29 }
 0x651   :  { %1991 = vmatprep.subr.mxu0 %v3360_v49  ;;  %2626 = vmatprep.subr.mxu1 %v3792_v27  ;;  %v1736_v37 = vrot.slane %v1731_v46, %v3851_v44  ;;  %v1971_v60 = vrot.slane %v1966_v15, %v3851_v44  ;;  %s2801_s30 = scalar_lea.vmem %s2160_s29, 128  ;;  %p2806_p2 = scmp.lt.s32.totalorder %s2160_s29, %s2160_s29 }
 0x652   :  { %1992 = vmatpush1.msra.mxu0 %v3364_v36  ;;  %2627 = vmatpush3.msra.mxu1 %v3366_v35  ;;  %p2802_p1 = scmp.ne.s32.totalorder %s2160_s29, %s2801_s30  ;;  %p2807_p3 = scmp.lt.s32.totalorder %s2801_s30, %s2801_s30 }
 0x653   :  { %1993 = vmatprep.subr.mxu0 %v3370_v45  ;;  %2628 = vmatprep.subr.mxu1 %v3792_v27  ;;  %v3852_v45 = vld [vmem:[#allocation23_spill] sm:$0xff] }
 0x654   :  { %1994 = vmatpush1.msra.mxu0 %v3374_v42  ;;  %2629 = vmatpush3.msra.mxu1 %v3376_v43  ;;  %v1740_v42 = vrot.slane %v1731_v46, %v3852_v45  ;;  %v1890_v43 = vld [vmem:[#allocation2 + $0x6] ss:$8 sm:$0x7]  ;;  %v1975_v28 = vrot.slane %v1966_v15, %v3852_v45  ;;  %p2808_p4 = por %p2807_p3, %p2806_p2 }
 0x655   :  { %1995 = vmatprep.subr.mxu0 %v3380_v41  ;;  %2630 = vmatprep.subr.mxu1 %v3792_v27 }
 0x656   :  { %1996 = vmatpush1.msra.mxu0 %v3384_v34  ;;  %2631 = vmatpush3.msra.mxu1 %v3386_v38  ;;  %p2809_p5 = pnand %p2808_p4, %p2802_p1 }
 0x657   :  { %1997 = vmatprep.subr.mxu0 %v3388_v51  ;;  %2632 = vmatprep.subr.mxu1 %v3792_v27 }
 0x658   :  { %1998 = vmatpush1.msra.mxu0 %v3392_v52  ;;  %2633 = vmatpush3.msra.mxu1 %v3394_v53  ;;  %v1899_v53 = vrot.slane %v1890_v43, 1 }
 0x659   :  { %1999 = vmatprep.subr.mxu0 %v3396_v54  ;;  %2634 = vmatprep.subr.mxu1 %v3792_v27 }
 0x65a   :  { %2000 = vmatpush1.msra.mxu0 %v3400_v55  ;;  %2635 = vmatpush3.msra.mxu1 %v3402_v56 }
 0x65b   :  { %2001 = vmatprep.subr.mxu0 %v3406_v57  ;;  %2636 = vmatprep.subr.mxu1 %v3792_v27 }
 0x65c   :  { %2002 = vmatpush1.msra.mxu0 %v3410_v58  ;;  %2637 = vmatpush3.msra.mxu1 %v3412_v59  ;;  %v1744_v58 = vrot.slane %v1731_v46, %v3142_v40 }
 0x65d   :  { %2003 = vmatprep.subr.mxu0 %v3416_v61  ;;  %2638 = vmatprep.subr.mxu1 %v3792_v27 }
 0x65e   :  { %2004 = vmatpush1.msra.mxu0 %v3420_v62  ;;  %2639 = vmatpush3.msra.mxu1 %v3422_v63 }
 0x65f   :  { %2005 = vmatprep.subr.mxu0 %v3426_v1  ;;  %2640 = vmatprep.subr.mxu1 %v3792_v27  ;;  %v1909_v1 = vrot.slane %v1890_v43, 2 }
 0x660   :  { %2006 = vmatpush1.msra.mxu0 %v3430_v3  ;;  %2641 = vmatpush3.msra.mxu1 %v3432_v4 }
 0x661   :  { %2007 = vmatprep.subr.mxu0 %v3436_v5  ;;  %2642 = vmatprep.subr.mxu1 %v3792_v27 }
 0x662   :  { %2008 = vmatpush1.msra.mxu0 %v3440_v6  ;;  %2643 = vmatpush3.msra.mxu1 %v3442_v7 }
 0x663   :  { %2009 = vmatprep.subr.mxu0 %v3446_v8  ;;  %2644 = vmatprep.subr.mxu1 %v3792_v27 }
 0x664   :  { %2010 = vmatpush1.msra.mxu0 %v3843_v29  ;;  %2645 = vmatpush3.msra.mxu1 %v3844_v30  ;;  %v2144_v30 = vrot.slane %v2125_v19, 2 }
 0x665   :  { %2011 = vmatprep.subr.mxu0 %v3845_v33  ;;  %2646 = vmatprep.subr.mxu1 %v3792_v27 }
 0x666   :  { %2012 = vmatpush1.msra.mxu0 %v3846_v47  ;;  %2647 = vmatpush3.msra.mxu1 %v3847_v48 }
 0x667   :  { %2013 = vmatprep.subr.mxu0 %v3848_v50  ;;  %2648 = vmatprep.subr.mxu1 %v3792_v27 }
 0x668   :  { %2014 = vmatpush1.msra.mxu0 %v3849_v32  ;;  %2047 = vmatprep.mubr.f32.mxu0 %v3792_v27 }
 0x669   :  { %2649 = vmatpush3.msra.mxu1 %v3850_v39  ;;  %2650 = vmatprep.mubr.msk.f32.mxu1 %vm2833_vm0, %v3792_v27 }
 0x709   :  { %v1814_v49 = vpop.f32.mrf.mxu0  ;;  %v1885_v36 = vpop.f32.mrf.mxu1 }
 0x70a   :  { %v1815_v35 = vadd.f32 %v1814_v49, %v1736_v37  ;;  %v1886_v61 = vadd.f32 %v1885_v36, %v1744_v58 }
 0x70b   :  { %v1816_v41 = vpop.f32.mrf.mxu0  ;;  %v2617_v34 = vpop.f32.mrf.mxu1 }
 0x70c   :  { %v1891_v38 = vadd.f32 %v1890_v43, %v1815_v35  ;;  %v1817_v52 = vadd.f32 %v1816_v41, %v1740_v42 }
 0x70e   :  { %v2181_v51 = vmul.f32 -1.442695, %v1891_v38  ;;  %v1901_v27 = vadd.f32 %v1899_v53, %v1817_v52 }
 0x710   :  { %2721 = vpow2.f32 %v2181_v51  ;;  %v2182_v54 = vmul.f32 -1.442695, %v1901_v27 }
 0x712   :  { %2723 = vpow2.f32 %v2182_v54 }
 0x71d   :  { %v2722_v55 = vpop.eup %2721 }
 0x71e   :  { %v1895_v56 = vadd.f32 1.0, %v2722_v55 }
 0x71f   :  { %v2724_v57 = vpop.eup %2723 }
 0x720   :  { %2725 = vrcp.f32 %v1895_v56  ;;  %v1905_v59 = vadd.f32 1.0, %v2724_v57 }
 0x722   :  { %2727 = vrcp.f32 %v1905_v59 }
 0x72d   :  { %v2726_v62 = vpop.eup %2725 }
 0x72e   :  { %v1908_v63 = vmul.f32 %v2726_v62, %v1886_v61 }
 0x72f   :  { %v2728_v4 = vpop.eup %2727 }
 0x730   :  { %v1911_v3 = vadd.f32 %v1909_v1, %v1908_v63  ;;  %v1913_v5 = vsub.f32 1.0, %v2728_v4  ;;  %v1915_v8 = vmul.f32 %v2728_v4, %v3647_v16 }
 0x732   :  { %2729 = vtanh.f32 %v1911_v3 }
 0x73f   :  { %v2730_v6 = vpop.eup %2729 }
 0x740   :  { %v1914_v7 = vmul.f32 %v2730_v6, %v1913_v5 }
 0x742   :  { %v1916_v12 = vadd.f32 %v1915_v8, %v1914_v7 }
 0x744   :  { %1917 = vst [vmem:[#allocation9 + $0x6] sm:$0x1] %v1916_v12  ;;  %2048 = vmatmul.mubr.f32.vlgmr.msra.gmra.mxu0 %v1916_v12  ;;  %2651 = vmatmul.mubr.f32.vlgmr.msra.gmra.mxu1 %v1916_v12 }
 0x804   :  { %v2049_v2 = vpop.f32.mrf.mxu0  ;;  %v2120_v31 = vpop.f32.mrf.mxu1 }
 0x805   :  { %v2050_v9 = vadd.f32 %v2049_v2, %v1971_v60  ;;  %v2121_v10 = vadd.f32 %v2120_v31, %v1979_v25 }
 0x806   :  { %v2051_v14 = vpop.f32.mrf.mxu0  ;;  %v2652_v26 = vpop.f32.mrf.mxu1 }
 0x807   :  { %v2126_v21 = vadd.f32 %v2125_v19, %v2050_v9  ;;  %v2052_v11 = vadd.f32 %v2051_v14, %v1975_v28 }
 0x809   :  { %v2183_v13 = vmul.f32 -1.442695, %v2126_v21  ;;  %v2136_v22 = vadd.f32 %v2134_v20, %v2052_v11 }
 0x80b   :  { %2731 = vpow2.f32 %v2183_v13  ;;  %v2184_v0 = vmul.f32 -1.442695, %v2136_v22 }
 0x80d   :  { %2733 = vpow2.f32 %v2184_v0 }
 0x818   :  { %v2732_v23 = vpop.eup %2731 }
 0x819   :  { %v2130_v18 = vadd.f32 1.0, %v2732_v23 }
 0x81a   :  { %v2734_v24 = vpop.eup %2733 }
 0x81b   :  { %2735 = vrcp.f32 %v2130_v18  ;;  %v2140_v17 = vadd.f32 1.0, %v2734_v24 }
 0x81d   :  { %2737 = vrcp.f32 %v2140_v17 }
 0x828   :  { %v2736_v16 = vpop.eup %2735 }
 0x829   :  { %v2143_v29 = vmul.f32 %v2736_v16, %v2121_v10 }
 0x82a   :  { %v2738_v47 = vpop.eup %2737 }
 0x82b   :  { %v2146_v33 = vadd.f32 %v2144_v30, %v2143_v29  ;;  %v2148_v48 = vsub.f32 1.0, %v2738_v47  ;;  %v2150_v39 = vmul.f32 %v2738_v47, %v1916_v12 }
 0x82d   :  { %2739 = vtanh.f32 %v2146_v33 }
 0x83a   :  { %v2740_v50 = vpop.eup %2739 }
 0x83b   :  { %v2149_v32 = vmul.f32 %v2740_v50, %v2148_v48 }
 0x83d   :  { %v2151_v46 = vadd.f32 %v2150_v39, %v2149_v32 }
 0x83f   :  { %2152 = vst [vmem:[#allocation9 + $0x7] sm:$0x1] %v2151_v46 }
 0x840   :  { %2812 = shalt.err (!%p2809_p5)
}
 0x841   :  { %2162 = dma.vmem_to_hbm [thread:$0]  %s2160_s29, 128, %s3739_s6, [#allocation5]  }
 0x842   :  { %2825 = dma.done.wait [#allocation5], 128  }
 0x843   :  { %2826 = vsyncadd [#allocation5], 4294967168 }
 0x844   :  { %2166 = vsyncpa [#allocation4], 1 }
 0x845   :  { %2167 = vsyncpa [#allocation7], 1 }
 0x846   :  { %2168 = vsyncpa [#allocation5], 1 }

</bundles_post_ra>
